<compile_context>
chip_gen: v7x
topology: tpu7x:2x2x1
jax: 0.10.0
libtpu: 0.0.40
codegen_flags: <defaults>
</compile_context>

<pallas_src>
import jax
import jax.numpy as jnp
import numpy as np
from jax import lax
from jax.experimental import pallas as pl
from jax.experimental.pallas import tpu as pltpu

BN_EPS = 1e-5

# Architecture constants: seqCNN(input_channels=4, output_size=5, kernel_sizes=(3,3,3))
N_BATCH = 2
C_IN, L_IN = 4, 109
K = 3
C1, C2, C3 = 8, 16, 32
L1 = L_IN - K + 1        # 107
L2 = L1 - K + 1          # 105
LP1 = L2 // 3            # 35
L3 = LP1 - K + 1         # 33
LP2 = L3 // 3            # 11
FLAT = C3 * LP2          # 352  (== fc1_num_neurons)
FC1, FC2, OUT = 120, 60, 5

# row offset of the channel mask inside the packed flatten-aux array (8-aligned)
MB_ROW_OFF = ((N_BATCH * LP2 + 7) // 8) * 8      # 24 for N_BATCH=2


# ----------------------------------------------------------------------------
# Single fused kernel
# ----------------------------------------------------------------------------
def seq_cnn_kernel(x_ref, convw_ref, chvec_ref, fcvec_ref,
                   sel1_ref, sel2_ref, flatpack_ref,
                   fw1_ref, fw2_ref, fw3_ref, o_ref):
    nb = x_ref.shape[0]

    # ---- unpack the packed small parameters (few DMAs, sliced in VMEM) ----
    b1 = chvec_ref[0:C1, 0:1]; g1 = chvec_ref[0:C1, 1:2]; be1 = chvec_ref[0:C1, 2:3]
    b2 = chvec_ref[0:C2, 3:4]; g2 = chvec_ref[0:C2, 4:5]; be2 = chvec_ref[0:C2, 5:6]
    b3 = chvec_ref[0:C3, 6:7]
    fb1 = fcvec_ref[0:1, 0:FC1]; fb2 = fcvec_ref[1:2, 0:FC2]; fb3 = fcvec_ref[2:3, 0:OUT]
    w1s = convw_ref[0:C1, 0:K * C_IN]                       # (8, 12)
    w2s = convw_ref[C1:C1 + C2, 0:K * C1]                   # (16, 24)
    w3s = convw_ref[C1 + C2:C1 + C2 + C3, 0:K * C2]         # (32, 48)

    def tap_stack(slice_fn, l_out):
        # Build the (K*C_in, nb*l_out) im2col-on-contraction operand:
        # sublane-stacked taps, lane-packed batch.
        rows = []
        for k in range(K):
            rows.append(jnp.concatenate(
                [slice_fn(n, k, l_out) for n in range(nb)], axis=1))
        return jnp.concatenate(rows, axis=0)

    def window_max3(y):
        w = y.shape[1] - 2
        return jnp.maximum(jnp.maximum(y[:, 0:w], y[:, 1:w + 1]), y[:, 2:w + 2])

    def batchnorm_relu(cv, gamma, beta, count):
        # two-pass (numerically safe) training-mode BatchNorm + ReLU
        inv = 1.0 / count
        mu = jnp.sum(cv, axis=1, keepdims=True) * inv
        d = cv - mu
        var = jnp.sum(d * d, axis=1, keepdims=True) * inv
        return jnp.maximum(d * (gamma * lax.rsqrt(var + BN_EPS)) + beta, 0.0)

    # ---- conv1 + BN1 + ReLU : one matmul for the whole batch ----
    xs = [x_ref[n] for n in range(nb)]                       # (C_IN, L_IN) each
    t1 = tap_stack(lambda n, k, lo: xs[n][:, k:k + lo], L1)  # (12, nb*L1)
    cv1 = jnp.dot(w1s, t1, preferred_element_type=jnp.float32) + b1
    y1 = batchnorm_relu(cv1, g1, be1, nb * L1)               # (C1, nb*L1)

    # ---- conv2 + BN2 + ReLU ----
    t2 = tap_stack(lambda n, k, lo: y1[:, n * L1 + k:n * L1 + k + lo], L2)
    cv2 = jnp.dot(w2s, t2, preferred_element_type=jnp.float32) + b2
    y2 = batchnorm_relu(cv2, g2, be2, nb * L2)               # (C2, nb*L2)

    # ---- pool1 : window max (VPU) + stride-3 selector matmul (MXU) ----
    p1 = jnp.dot(window_max3(y2), sel1_ref[...],
                 preferred_element_type=jnp.float32)         # (C2, nb*LP1)

    # ---- conv3 + ReLU ----
    t3 = tap_stack(lambda n, k, lo: p1[:, n * LP1 + k:n * LP1 + k + lo], L3)
    r3 = jnp.maximum(jnp.dot(w3s, t3, preferred_element_type=jnp.float32) + b3,
                     0.0)                                    # (C3, nb*L3)

    # ---- pool2 ----
    p2 = jnp.dot(window_max3(r3), sel2_ref[...],
                 preferred_element_type=jnp.float32)         # (C3, nb*LP2)

    # ---- flatten (torch .view channel-major order) without per-channel stores:
    #      spread matmul + per-channel mask + sublane reduction ----
    s1b = flatpack_ref[0:nb * LP2, :]                        # (nb*LP2, nb*FLAT)
    mb = flatpack_ref[MB_ROW_OFF:MB_ROW_OFF + C3, :]         # (C3,    nb*FLAT)
    e = jnp.dot(p2, s1b, preferred_element_type=jnp.float32)  # (C3, nb*FLAT)
    fcat = jnp.sum(e * mb, axis=0, keepdims=True)            # (1, nb*FLAT)
    flat = jnp.concatenate(
        [fcat[:, n * FLAT:(n + 1) * FLAT] for n in range(nb)], axis=0)  # (nb, FLAT)

    # ---- fused MLP: fc1 -> ReLU -> fc2 -> ReLU -> fc3 ----
    h1 = jnp.maximum(jnp.dot(flat, fw1_ref[...],
                             preferred_element_type=jnp.float32) + fb1, 0.0)
    h2 = jnp.maximum(jnp.dot(h1, fw2_ref[...],
                             preferred_element_type=jnp.float32) + fb2, 0.0)
    o_ref[...] = (jnp.dot(h2, fw3_ref[...],
                          preferred_element_type=jnp.float32) + fb3
                  ).astype(o_ref.dtype)


# ----------------------------------------------------------------------------
# One-time parameter preprocessing (hoisted out of the per-forward path)
# ----------------------------------------------------------------------------
def prepare_params(p, n_batch=N_BATCH):
    f32 = jnp.float32

    def stack_w(w):               # (C_out, C_in, K) -> (C_out, K*C_in), [o, k*C_in+c]
        co, ci, k = w.shape
        return jnp.transpose(w, (0, 2, 1)).reshape(co, k * ci)

    # conv weights packed along sublanes (8-aligned row offsets)
    convw = jnp.zeros((C1 + C2 + C3, K * C2), f32)
    convw = convw.at[0:C1, 0:K * C_IN].set(stack_w(p["w1"]))
    convw = convw.at[C1:C1 + C2, 0:K * C1].set(stack_w(p["w2"]))
    convw = convw.at[C1 + C2:, 0:K * C2].set(stack_w(p["w3"]))

    # per-channel bias / gamma / beta vectors as columns of one small array
    chvec = jnp.zeros((C3, 8), f32)
    for col, (name, c) in enumerate([("b1", C1), ("g1", C1), ("be1", C1),
                                     ("b2", C2), ("g2", C2), ("be2", C2),
                                     ("b3", C3)]):
        chvec = chvec.at[0:c, col].set(p[name])

    # FC biases as rows of one small array
    fcvec = jnp.zeros((3, FC1), f32)
    fcvec = fcvec.at[0, 0:FC1].set(p["fb1"])
    fcvec = fcvec.at[1, 0:FC2].set(p["fb2"])
    fcvec = fcvec.at[2, 0:OUT].set(p["fb3"])

    def pool_selector(l_in, lp):
        # maps window-max lane n*l_in + 3j -> output lane n*lp + j, batch-packed
        rows = n_batch * l_in - 2
        cols = n_batch * lp
        i = jnp.arange(rows)[:, None]
        o = jnp.arange(cols)[None, :]
        return (i == (o // lp) * l_in + 3 * (o % lp)).astype(f32)

    # flatten helpers packed into one array:
    #   rows [0 : nb*LP2]          spread selector  s1b[q, t] = [q == (t//FLAT)*LP2 + t%LP2]
    #   rows [MB_ROW_OFF : +C3]    channel mask     mb[ch, t] = [(t%FLAT)//LP2 == ch]
    t = jnp.arange(n_batch * FLAT)
    s1b = (jnp.arange(n_batch * LP2)[:, None] ==
           ((t // FLAT) * LP2 + t % LP2)[None, :]).astype(f32)
    mb = (jnp.arange(C3)[:, None] == ((t % FLAT) // LP2)[None, :]).astype(f32)
    flatpack = jnp.zeros((MB_ROW_OFF + C3, n_batch * FLAT), f32)
    flatpack = flatpack.at[0:n_batch * LP2, :].set(s1b)
    flatpack = flatpack.at[MB_ROW_OFF:, :].set(mb)

    return {
        "convw": convw, "chvec": chvec, "fcvec": fcvec,
        "sel1": pool_selector(L2, LP1), "sel2": pool_selector(L3, LP2),
        "flatpack": flatpack,
        "fw1t": p["fw1"].T.astype(f32),
        "fw2t": p["fw2"].T.astype(f32),
        "fw3t": p["fw3"].T.astype(f32),
    }


@jax.jit
def seq_cnn_forward(x, pp):
    nb = x.shape[0]

    def vmem():
        return pl.BlockSpec(memory_space=pltpu.MemorySpace.VMEM)

    return pl.pallas_call(
        seq_cnn_kernel,
        out_shape=jax.ShapeDtypeStruct((nb, OUT), jnp.float32),
        in_specs=[vmem() for _ in range(10)],
        out_specs=vmem(),
        cost_estimate=pl.CostEstimate(flops=2_200_000, transcendentals=0,
                                      bytes_accessed=450_000),
    )(x, pp["convw"], pp["chvec"], pp["fcvec"], pp["sel1"], pp["sel2"],
      pp["flatpack"], pp["fw1t"], pp["fw2t"], pp["fw3t"])


# ----------------------------------------------------------------------------
# Deterministic parameter init (shapes from seqCNN.__init__)
#   f1: 4->8 (k=3), f2: 8->16 (k=3), f3: 16->32 (k=3)
#   fc1: 352->120, fc2: 120->60, fc3: 60->5
# ----------------------------------------------------------------------------
def init_params(key):
    ks = jax.random.split(key, 16)

    def w(k, shape, scale=0.1):
        return (scale * jax.random.normal(k, shape)).astype(jnp.float32)

    return {
        "w1": w(ks[0], (C1, C_IN, K)), "b1": w(ks[1], (C1,), 0.01),
        "g1": 1.0 + w(ks[2], (C1,), 0.05), "be1": w(ks[3], (C1,), 0.05),
        "w2": w(ks[4], (C2, C1, K)), "b2": w(ks[5], (C2,), 0.01),
        "g2": 1.0 + w(ks[6], (C2,), 0.05), "be2": w(ks[7], (C2,), 0.05),
        "w3": w(ks[8], (C3, C2, K)), "b3": w(ks[9], (C3,), 0.01),
        "fw1": w(ks[10], (FC1, FLAT)), "fb1": w(ks[11], (FC1,), 0.01),
        "fw2": w(ks[12], (FC2, FC1)), "fb2": w(ks[13], (FC2,), 0.01),
        "fw3": w(ks[14], (OUT, FC2)), "fb3": w(ks[15], (OUT,), 0.01),
    }


# ----------------------------------------------------------------------------
# Pure-JAX reference (for correctness check); training-mode BatchNorm.
# TODO(synk): nn.BatchNorm1d running-mean/var buffer updates (a training-time
#             side effect) are not emitted; the returned forward output matches.
# ----------------------------------------------------------------------------
def reference_forward(x, p):
    hi = lax.Precision.HIGHEST

    def conv1d(x, w, b):
        y = lax.conv_general_dilated(x, w, (1,), "VALID",
                                     dimension_numbers=("NCH", "OIH", "NCH"),
                                     precision=hi)
        return y + b[None, :, None]

    def bn(x, g, be):
        m = jnp.mean(x, axis=(0, 2), keepdims=True)
        v = jnp.mean((x - m) ** 2, axis=(0, 2), keepdims=True)
        return (x - m) * lax.rsqrt(v + BN_EPS) * g[None, :, None] + be[None, :, None]

    def pool3(x):
        n, c, l = x.shape
        lp = l // 3
        return jnp.max(x[:, :, :3 * lp].reshape(n, c, lp, 3), axis=-1)

    out = jax.nn.relu(bn(conv1d(x, p["w1"], p["b1"]), p["g1"], p["be1"]))
    out = jax.nn.relu(bn(conv1d(out, p["w2"], p["b2"]), p["g2"], p["be2"]))
    out = pool3(out)
    out = jax.nn.relu(conv1d(out, p["w3"], p["b3"]))
    out = pool3(out)
    out = out.reshape(out.shape[0], -1)
    out = jax.nn.relu(jnp.dot(out, p["fw1"].T, precision=hi) + p["fb1"])
    out = jax.nn.relu(jnp.dot(out, p["fw2"].T, precision=hi) + p["fb2"])
    return jnp.dot(out, p["fw3"].T, precision=hi) + p["fb3"]


if __name__ == "__main__":
    key = jax.random.PRNGKey(0)
    pkey, xkey = jax.random.split(key)
    params = init_params(pkey)
    prepped = prepare_params(params)      # one-time prep, out of the forward path

    # L=109 so the flattened size after the conv/pool stack is 32*11 = 352 = fc1 input.
    x = jax.random.normal(xkey, (N_BATCH, C_IN, L_IN), dtype=jnp.float32)

    out = jax.block_until_ready(seq_cnn_forward(x, prepped))
    assert out.shape == (N_BATCH, OUT), out.shape

    ref = reference_forward(x, params)
    np.testing.assert_allclose(np.asarray(out), np.asarray(ref), rtol=1e-3, atol=1e-3)

    print("KERNEL_OK")
</pallas_src>

<mosaic_0001>
module attributes {stable_mosaic.version = 11 : i64} {
  func.func @seq_cnn_kernel(%arg0: memref<2x4x109xf32, #tpu.memory_space<vmem>>, %arg1: memref<56x48xf32, #tpu.memory_space<vmem>>, %arg2: memref<32x8xf32, #tpu.memory_space<vmem>>, %arg3: memref<3x120xf32, #tpu.memory_space<vmem>>, %arg4: memref<208x70xf32, #tpu.memory_space<vmem>>, %arg5: memref<64x22xf32, #tpu.memory_space<vmem>>, %arg6: memref<56x704xf32, #tpu.memory_space<vmem>>, %arg7: memref<352x120xf32, #tpu.memory_space<vmem>>, %arg8: memref<120x60xf32, #tpu.memory_space<vmem>>, %arg9: memref<60x5xf32, #tpu.memory_space<vmem>>, %arg10: memref<2x5xf32, #tpu.memory_space<vmem>>) attributes {dimension_semantics = [], scalar_prefetch = 0 : i64, scratch_operands = 0 : i64, tpu.core_type = #tpu.core_type<tc>} {
    %c0 = arith.constant 0 : index
    %c0_0 = arith.constant 0 : index
    %0 = vector.load %arg2[%c0, %c0_0] : memref<32x8xf32, #tpu.memory_space<vmem>>, vector<8x1xf32>
    %c0_1 = arith.constant 0 : index
    %c1 = arith.constant 1 : index
    %1 = vector.load %arg2[%c0_1, %c1] : memref<32x8xf32, #tpu.memory_space<vmem>>, vector<8x1xf32>
    %c0_2 = arith.constant 0 : index
    %c2 = arith.constant 2 : index
    %2 = vector.load %arg2[%c0_2, %c2] : memref<32x8xf32, #tpu.memory_space<vmem>>, vector<8x1xf32>
    %c0_3 = arith.constant 0 : index
    %c3 = arith.constant 3 : index
    %3 = vector.load %arg2[%c0_3, %c3] : memref<32x8xf32, #tpu.memory_space<vmem>>, vector<16x1xf32>
    %c0_4 = arith.constant 0 : index
    %c4 = arith.constant 4 : index
    %4 = vector.load %arg2[%c0_4, %c4] : memref<32x8xf32, #tpu.memory_space<vmem>>, vector<16x1xf32>
    %c0_5 = arith.constant 0 : index
    %c5 = arith.constant 5 : index
    %5 = vector.load %arg2[%c0_5, %c5] : memref<32x8xf32, #tpu.memory_space<vmem>>, vector<16x1xf32>
    %c0_6 = arith.constant 0 : index
    %c6 = arith.constant 6 : index
    %6 = vector.load %arg2[%c0_6, %c6] : memref<32x8xf32, #tpu.memory_space<vmem>>, vector<32x1xf32>
    %c0_7 = arith.constant 0 : index
    %c0_8 = arith.constant 0 : index
    %7 = vector.load %arg3[%c0_7, %c0_8] : memref<3x120xf32, #tpu.memory_space<vmem>>, vector<1x120xf32>
    %c1_9 = arith.constant 1 : index
    %c0_10 = arith.constant 0 : index
    %8 = vector.load %arg3[%c1_9, %c0_10] : memref<3x120xf32, #tpu.memory_space<vmem>>, vector<1x60xf32>
    %c2_11 = arith.constant 2 : index
    %c0_12 = arith.constant 0 : index
    %9 = vector.load %arg3[%c2_11, %c0_12] : memref<3x120xf32, #tpu.memory_space<vmem>>, vector<1x5xf32>
    %c0_13 = arith.constant 0 : index
    %c0_14 = arith.constant 0 : index
    %10 = vector.load %arg1[%c0_13, %c0_14] : memref<56x48xf32, #tpu.memory_space<vmem>>, vector<8x12xf32>
    %c8 = arith.constant 8 : index
    %c0_15 = arith.constant 0 : index
    %11 = vector.load %arg1[%c8, %c0_15] : memref<56x48xf32, #tpu.memory_space<vmem>>, vector<16x24xf32>
    %c24 = arith.constant 24 : index
    %c0_16 = arith.constant 0 : index
    %12 = vector.load %arg1[%c24, %c0_16] : memref<56x48xf32, #tpu.memory_space<vmem>>, vector<32x48xf32>
    %c0_17 = arith.constant 0 : index
    %c0_18 = arith.constant 0 : index
    %c0_19 = arith.constant 0 : index
    %13 = vector.load %arg0[%c0_17, %c0_18, %c0_19] : memref<2x4x109xf32, #tpu.memory_space<vmem>>, vector<1x4x109xf32>
    %14 = vector.shape_cast %13 : vector<1x4x109xf32> to vector<4x109xf32>
    %c1_20 = arith.constant 1 : index
    %c0_21 = arith.constant 0 : index
    %c0_22 = arith.constant 0 : index
    %15 = vector.load %arg0[%c1_20, %c0_21, %c0_22] : memref<2x4x109xf32, #tpu.memory_space<vmem>>, vector<1x4x109xf32>
    %16 = vector.shape_cast %15 : vector<1x4x109xf32> to vector<4x109xf32>
    %17 = vector.extract_strided_slice %14 {offsets = [0, 0], sizes = [4, 107], strides = [1, 1]} : vector<4x109xf32> to vector<4x107xf32>
    %18 = vector.extract_strided_slice %16 {offsets = [0, 0], sizes = [4, 107], strides = [1, 1]} : vector<4x109xf32> to vector<4x107xf32>
    %19 = tpu.concatenate %17, %18 in 1 : vector<4x107xf32>, vector<4x107xf32> -> vector<4x214xf32>
    %20 = vector.extract_strided_slice %14 {offsets = [0, 1], sizes = [4, 107], strides = [1, 1]} : vector<4x109xf32> to vector<4x107xf32>
    %21 = vector.extract_strided_slice %16 {offsets = [0, 1], sizes = [4, 107], strides = [1, 1]} : vector<4x109xf32> to vector<4x107xf32>
    %22 = tpu.concatenate %20, %21 in 1 : vector<4x107xf32>, vector<4x107xf32> -> vector<4x214xf32>
    %23 = vector.extract_strided_slice %14 {offsets = [0, 2], sizes = [4, 107], strides = [1, 1]} : vector<4x109xf32> to vector<4x107xf32>
    %24 = vector.extract_strided_slice %16 {offsets = [0, 2], sizes = [4, 107], strides = [1, 1]} : vector<4x109xf32> to vector<4x107xf32>
    %25 = tpu.concatenate %23, %24 in 1 : vector<4x107xf32>, vector<4x107xf32> -> vector<4x214xf32>
    %26 = tpu.concatenate %19, %22, %25 in 0 : vector<4x214xf32>, vector<4x214xf32>, vector<4x214xf32> -> vector<12x214xf32>
    %cst = arith.constant dense<0.000000e+00> : vector<8x214xf32>
    %27 = tpu.matmul %10, %26, %cst {dimension_numbers = #tpu.dot_dimension_numbers<[1], [0], [0], [1], [0, 0, 1, 1], [], []>} : vector<8x12xf32>, vector<12x214xf32>, vector<8x214xf32> -> vector<8x214xf32>
    %28 = vector.broadcast %0 : vector<8x1xf32> to vector<8x214xf32>
    %29 = arith.addf %27, %28 : vector<8x214xf32>
    %cst_23 = arith.constant dense<0.000000e+00> : vector<8xf32>
    %30 = vector.multi_reduction <add>, %29, %cst_23 [1] : vector<8x214xf32> to vector<8xf32>
    %31 = vector.shape_cast %30 : vector<8xf32> to vector<8x1xf32>
    %cst_24 = arith.constant 0.00467289705 : f32
    %32 = vector.broadcast %cst_24 : f32 to vector<8x1xf32>
    %33 = arith.mulf %31, %32 : vector<8x1xf32>
    %34 = vector.broadcast %33 : vector<8x1xf32> to vector<8x214xf32>
    %35 = arith.subf %29, %34 : vector<8x214xf32>
    %36 = arith.mulf %35, %35 : vector<8x214xf32>
    %cst_25 = arith.constant dense<0.000000e+00> : vector<8xf32>
    %37 = vector.multi_reduction <add>, %36, %cst_25 [1] : vector<8x214xf32> to vector<8xf32>
    %38 = vector.shape_cast %37 : vector<8xf32> to vector<8x1xf32>
    %cst_26 = arith.constant 0.00467289705 : f32
    %39 = vector.broadcast %cst_26 : f32 to vector<8x1xf32>
    %40 = arith.mulf %38, %39 : vector<8x1xf32>
    %cst_27 = arith.constant 9.99999974E-6 : f32
    %41 = vector.broadcast %cst_27 : f32 to vector<8x1xf32>
    %42 = arith.addf %40, %41 : vector<8x1xf32>
    %43 = math.rsqrt %42 : vector<8x1xf32>
    %44 = arith.mulf %1, %43 : vector<8x1xf32>
    %45 = vector.broadcast %44 : vector<8x1xf32> to vector<8x214xf32>
    %46 = arith.mulf %35, %45 : vector<8x214xf32>
    %47 = vector.broadcast %2 : vector<8x1xf32> to vector<8x214xf32>
    %48 = arith.addf %46, %47 : vector<8x214xf32>
    %cst_28 = arith.constant 0.000000e+00 : f32
    %49 = vector.broadcast %cst_28 : f32 to vector<8x214xf32>
    %50 = arith.maximumf %48, %49 : vector<8x214xf32>
    %51 = vector.extract_strided_slice %50 {offsets = [0, 0], sizes = [8, 105], strides = [1, 1]} : vector<8x214xf32> to vector<8x105xf32>
    %52 = vector.extract_strided_slice %50 {offsets = [0, 107], sizes = [8, 105], strides = [1, 1]} : vector<8x214xf32> to vector<8x105xf32>
    %53 = tpu.concatenate %51, %52 in 1 : vector<8x105xf32>, vector<8x105xf32> -> vector<8x210xf32>
    %54 = vector.extract_strided_slice %50 {offsets = [0, 1], sizes = [8, 105], strides = [1, 1]} : vector<8x214xf32> to vector<8x105xf32>
    %55 = vector.extract_strided_slice %50 {offsets = [0, 108], sizes = [8, 105], strides = [1, 1]} : vector<8x214xf32> to vector<8x105xf32>
    %56 = tpu.concatenate %54, %55 in 1 : vector<8x105xf32>, vector<8x105xf32> -> vector<8x210xf32>
    %57 = vector.extract_strided_slice %50 {offsets = [0, 2], sizes = [8, 105], strides = [1, 1]} : vector<8x214xf32> to vector<8x105xf32>
    %58 = vector.extract_strided_slice %50 {offsets = [0, 109], sizes = [8, 105], strides = [1, 1]} : vector<8x214xf32> to vector<8x105xf32>
    %59 = tpu.concatenate %57, %58 in 1 : vector<8x105xf32>, vector<8x105xf32> -> vector<8x210xf32>
    %60 = tpu.concatenate %53, %56, %59 in 0 : vector<8x210xf32>, vector<8x210xf32>, vector<8x210xf32> -> vector<24x210xf32>
    %cst_29 = arith.constant dense<0.000000e+00> : vector<16x210xf32>
    %61 = tpu.matmul %11, %60, %cst_29 {dimension_numbers = #tpu.dot_dimension_numbers<[1], [0], [0], [1], [0, 0, 1, 1], [], []>} : vector<16x24xf32>, vector<24x210xf32>, vector<16x210xf32> -> vector<16x210xf32>
    %62 = vector.broadcast %3 : vector<16x1xf32> to vector<16x210xf32>
    %63 = arith.addf %61, %62 : vector<16x210xf32>
    %cst_30 = arith.constant dense<0.000000e+00> : vector<16xf32>
    %64 = vector.multi_reduction <add>, %63, %cst_30 [1] : vector<16x210xf32> to vector<16xf32>
    %65 = vector.shape_cast %64 : vector<16xf32> to vector<16x1xf32>
    %cst_31 = arith.constant 0.00476190494 : f32
    %66 = vector.broadcast %cst_31 : f32 to vector<16x1xf32>
    %67 = arith.mulf %65, %66 : vector<16x1xf32>
    %68 = vector.broadcast %67 : vector<16x1xf32> to vector<16x210xf32>
    %69 = arith.subf %63, %68 : vector<16x210xf32>
    %70 = arith.mulf %69, %69 : vector<16x210xf32>
    %cst_32 = arith.constant dense<0.000000e+00> : vector<16xf32>
    %71 = vector.multi_reduction <add>, %70, %cst_32 [1] : vector<16x210xf32> to vector<16xf32>
    %72 = vector.shape_cast %71 : vector<16xf32> to vector<16x1xf32>
    %cst_33 = arith.constant 0.00476190494 : f32
    %73 = vector.broadcast %cst_33 : f32 to vector<16x1xf32>
    %74 = arith.mulf %72, %73 : vector<16x1xf32>
    %cst_34 = arith.constant 9.99999974E-6 : f32
    %75 = vector.broadcast %cst_34 : f32 to vector<16x1xf32>
    %76 = arith.addf %74, %75 : vector<16x1xf32>
    %77 = math.rsqrt %76 : vector<16x1xf32>
    %78 = arith.mulf %4, %77 : vector<16x1xf32>
    %79 = vector.broadcast %78 : vector<16x1xf32> to vector<16x210xf32>
    %80 = arith.mulf %69, %79 : vector<16x210xf32>
    %81 = vector.broadcast %5 : vector<16x1xf32> to vector<16x210xf32>
    %82 = arith.addf %80, %81 : vector<16x210xf32>
    %cst_35 = arith.constant 0.000000e+00 : f32
    %83 = vector.broadcast %cst_35 : f32 to vector<16x210xf32>
    %84 = arith.maximumf %82, %83 : vector<16x210xf32>
    %85 = vector.extract_strided_slice %84 {offsets = [0, 0], sizes = [16, 208], strides = [1, 1]} : vector<16x210xf32> to vector<16x208xf32>
    %86 = vector.extract_strided_slice %84 {offsets = [0, 1], sizes = [16, 208], strides = [1, 1]} : vector<16x210xf32> to vector<16x208xf32>
    %87 = arith.maximumf %85, %86 : vector<16x208xf32>
    %88 = vector.extract_strided_slice %84 {offsets = [0, 2], sizes = [16, 208], strides = [1, 1]} : vector<16x210xf32> to vector<16x208xf32>
    %89 = arith.maximumf %87, %88 : vector<16x208xf32>
    %c0_36 = arith.constant 0 : index
    %c0_37 = arith.constant 0 : index
    %90 = vector.load %arg4[%c0_36, %c0_37] : memref<208x70xf32, #tpu.memory_space<vmem>>, vector<208x70xf32>
    %cst_38 = arith.constant dense<0.000000e+00> : vector<16x70xf32>
    %91 = tpu.matmul %89, %90, %cst_38 {dimension_numbers = #tpu.dot_dimension_numbers<[1], [0], [0], [1], [0, 0, 1, 1], [], []>} : vector<16x208xf32>, vector<208x70xf32>, vector<16x70xf32> -> vector<16x70xf32>
    %92 = vector.extract_strided_slice %91 {offsets = [0, 0], sizes = [16, 33], strides = [1, 1]} : vector<16x70xf32> to vector<16x33xf32>
    %93 = vector.extract_strided_slice %91 {offsets = [0, 35], sizes = [16, 33], strides = [1, 1]} : vector<16x70xf32> to vector<16x33xf32>
    %94 = tpu.concatenate %92, %93 in 1 : vector<16x33xf32>, vector<16x33xf32> -> vector<16x66xf32>
    %95 = vector.extract_strided_slice %91 {offsets = [0, 1], sizes = [16, 33], strides = [1, 1]} : vector<16x70xf32> to vector<16x33xf32>
    %96 = vector.extract_strided_slice %91 {offsets = [0, 36], sizes = [16, 33], strides = [1, 1]} : vector<16x70xf32> to vector<16x33xf32>
    %97 = tpu.concatenate %95, %96 in 1 : vector<16x33xf32>, vector<16x33xf32> -> vector<16x66xf32>
    %98 = vector.extract_strided_slice %91 {offsets = [0, 2], sizes = [16, 33], strides = [1, 1]} : vector<16x70xf32> to vector<16x33xf32>
    %99 = vector.extract_strided_slice %91 {offsets = [0, 37], sizes = [16, 33], strides = [1, 1]} : vector<16x70xf32> to vector<16x33xf32>
    %100 = tpu.concatenate %98, %99 in 1 : vector<16x33xf32>, vector<16x33xf32> -> vector<16x66xf32>
    %101 = tpu.concatenate %94, %97, %100 in 0 : vector<16x66xf32>, vector<16x66xf32>, vector<16x66xf32> -> vector<48x66xf32>
    %cst_39 = arith.constant dense<0.000000e+00> : vector<32x66xf32>
    %102 = tpu.matmul %12, %101, %cst_39 {dimension_numbers = #tpu.dot_dimension_numbers<[1], [0], [0], [1], [0, 0, 1, 1], [], []>} : vector<32x48xf32>, vector<48x66xf32>, vector<32x66xf32> -> vector<32x66xf32>
    %103 = vector.broadcast %6 : vector<32x1xf32> to vector<32x66xf32>
    %104 = arith.addf %102, %103 : vector<32x66xf32>
    %cst_40 = arith.constant 0.000000e+00 : f32
    %105 = vector.broadcast %cst_40 : f32 to vector<32x66xf32>
    %106 = arith.maximumf %104, %105 : vector<32x66xf32>
    %107 = vector.extract_strided_slice %106 {offsets = [0, 0], sizes = [32, 64], strides = [1, 1]} : vector<32x66xf32> to vector<32x64xf32>
    %108 = vector.extract_strided_slice %106 {offsets = [0, 1], sizes = [32, 64], strides = [1, 1]} : vector<32x66xf32> to vector<32x64xf32>
    %109 = arith.maximumf %107, %108 : vector<32x64xf32>
    %110 = vector.extract_strided_slice %106 {offsets = [0, 2], sizes = [32, 64], strides = [1, 1]} : vector<32x66xf32> to vector<32x64xf32>
    %111 = arith.maximumf %109, %110 : vector<32x64xf32>
    %c0_41 = arith.constant 0 : index
    %c0_42 = arith.constant 0 : index
    %112 = vector.load %arg5[%c0_41, %c0_42] : memref<64x22xf32, #tpu.memory_space<vmem>>, vector<64x22xf32>
    %cst_43 = arith.constant dense<0.000000e+00> : vector<32x22xf32>
    %113 = tpu.matmul %111, %112, %cst_43 {dimension_numbers = #tpu.dot_dimension_numbers<[1], [0], [0], [1], [0, 0, 1, 1], [], []>} : vector<32x64xf32>, vector<64x22xf32>, vector<32x22xf32> -> vector<32x22xf32>
    %c0_44 = arith.constant 0 : index
    %c0_45 = arith.constant 0 : index
    %114 = vector.load %arg6[%c0_44, %c0_45] : memref<56x704xf32, #tpu.memory_space<vmem>>, vector<22x704xf32>
    %c24_46 = arith.constant 24 : index
    %c0_47 = arith.constant 0 : index
    %115 = vector.load %arg6[%c24_46, %c0_47] : memref<56x704xf32, #tpu.memory_space<vmem>>, vector<32x704xf32>
    %cst_48 = arith.constant dense<0.000000e+00> : vector<32x704xf32>
    %116 = tpu.matmul %113, %114, %cst_48 {dimension_numbers = #tpu.dot_dimension_numbers<[1], [0], [0], [1], [0, 0, 1, 1], [], []>} : vector<32x22xf32>, vector<22x704xf32>, vector<32x704xf32> -> vector<32x704xf32>
    %117 = arith.mulf %116, %115 : vector<32x704xf32>
    %cst_49 = arith.constant dense<0.000000e+00> : vector<704xf32>
    %118 = vector.multi_reduction <add>, %117, %cst_49 [0] : vector<32x704xf32> to vector<704xf32>
    %119 = vector.shape_cast %118 : vector<704xf32> to vector<1x704xf32>
    %120 = vector.extract_strided_slice %119 {offsets = [0, 0], sizes = [1, 352], strides = [1, 1]} : vector<1x704xf32> to vector<1x352xf32>
    %121 = vector.extract_strided_slice %119 {offsets = [0, 352], sizes = [1, 352], strides = [1, 1]} : vector<1x704xf32> to vector<1x352xf32>
    %122 = tpu.concatenate %120, %121 in 0 : vector<1x352xf32>, vector<1x352xf32> -> vector<2x352xf32>
    %c0_50 = arith.constant 0 : index
    %c0_51 = arith.constant 0 : index
    %123 = vector.load %arg7[%c0_50, %c0_51] : memref<352x120xf32, #tpu.memory_space<vmem>>, vector<352x120xf32>
    %cst_52 = arith.constant dense<0.000000e+00> : vector<2x120xf32>
    %124 = tpu.matmul %122, %123, %cst_52 {dimension_numbers = #tpu.dot_dimension_numbers<[1], [0], [0], [1], [0, 0, 1, 1], [], []>} : vector<2x352xf32>, vector<352x120xf32>, vector<2x120xf32> -> vector<2x120xf32>
    %125 = vector.broadcast %7 : vector<1x120xf32> to vector<2x120xf32>
    %126 = arith.addf %124, %125 : vector<2x120xf32>
    %cst_53 = arith.constant 0.000000e+00 : f32
    %127 = vector.broadcast %cst_53 : f32 to vector<2x120xf32>
    %128 = arith.maximumf %126, %127 : vector<2x120xf32>
    %c0_54 = arith.constant 0 : index
    %c0_55 = arith.constant 0 : index
    %129 = vector.load %arg8[%c0_54, %c0_55] : memref<120x60xf32, #tpu.memory_space<vmem>>, vector<120x60xf32>
    %cst_56 = arith.constant dense<0.000000e+00> : vector<2x60xf32>
    %130 = tpu.matmul %128, %129, %cst_56 {dimension_numbers = #tpu.dot_dimension_numbers<[1], [0], [0], [1], [0, 0, 1, 1], [], []>} : vector<2x120xf32>, vector<120x60xf32>, vector<2x60xf32> -> vector<2x60xf32>
    %131 = vector.broadcast %8 : vector<1x60xf32> to vector<2x60xf32>
    %132 = arith.addf %130, %131 : vector<2x60xf32>
    %cst_57 = arith.constant 0.000000e+00 : f32
    %133 = vector.broadcast %cst_57 : f32 to vector<2x60xf32>
    %134 = arith.maximumf %132, %133 : vector<2x60xf32>
    %c0_58 = arith.constant 0 : index
    %c0_59 = arith.constant 0 : index
    %135 = vector.load %arg9[%c0_58, %c0_59] : memref<60x5xf32, #tpu.memory_space<vmem>>, vector<60x5xf32>
    %cst_60 = arith.constant dense<0.000000e+00> : vector<2x5xf32>
    %136 = tpu.matmul %134, %135, %cst_60 {dimension_numbers = #tpu.dot_dimension_numbers<[1], [0], [0], [1], [0, 0, 1, 1], [], []>} : vector<2x60xf32>, vector<60x5xf32>, vector<2x5xf32> -> vector<2x5xf32>
    %137 = vector.broadcast %9 : vector<1x5xf32> to vector<2x5xf32>
    %138 = arith.addf %136, %137 : vector<2x5xf32>
    %c0_61 = arith.constant 0 : index
    %c0_62 = arith.constant 0 : index
    %139 = vector.load %arg10[%c0_61, %c0_62] : memref<2x5xf32, #tpu.memory_space<vmem>>, vector<2x5xf32>
    tpu.vector_store %arg10[%c0_61, %c0_62], %138 {strides = array<i32>} : memref<2x5xf32, #tpu.memory_space<vmem>>, vector<2x5xf32>,
    return
  }
}

</mosaic_0001>

<bundles_post_ra>
// kernel: seq_cnn_forward.1
= control target key start
LH: loop header
LB: loop body
LE: loop exit
PB: predicated region body
PF: predicated region fallthrough
CT: control target
= control target key end

     0   :  { %15 = vsyncpa [#allocation3], 0  ;;  %s3045_s0 = inlined_call_operand.hbm [shape: f32[2,4,109], index: 0, kind: input, shape index: {}]   ;;  %s3046_s1 = inlined_call_operand.vmem [shape: f32[56,48], index: 1, kind: input, shape index: {}]   ;;  %s3047_s2 = inlined_call_operand.vmem [shape: f32[32,8], index: 2, kind: input, shape index: {}]   ;;  %s3048_s3 = inlined_call_operand.hbm [shape: f32[3,120], index: 3, kind: input, shape index: {}]   ;;  %s3049_s4 = inlined_call_operand.vmem [shape: f32[208,70], index: 4, kind: input, shape index: {}]   ;;  %s3050_s5 = inlined_call_operand.vmem [shape: f32[64,22], index: 5, kind: input, shape index: {}]   ;;  %s3051_s6 = inlined_call_operand.vmem [shape: f32[56,704], index: 6, kind: input, shape index: {}]   ;;  %s3052_s7 = inlined_call_operand.vmem [shape: f32[352,120], index: 7, kind: input, shape index: {}]   ;;  %s3053_s8 = inlined_call_operand.vmem [shape: f32[120,60], index: 8, kind: input, shape index: {}]   ;;  %s3054_s9 = inlined_call_operand.vmem [shape: f32[60,5], index: 9, kind: input, shape index: {}]   ;;  %s3055_s10 = inlined_call_operand.hbm [shape: f32[2,5], index: 10, kind: output, shape index: {}]  }
   0x1   :  { %16 = vsyncpa [#allocation6], 0 }
   0x2   :  { %17 = vsyncpa [#allocation4], 0  ;;  %s2277_s13 = smov [#allocation2]   ;;  %s2205_s17 = scalar_lea.hbm %s3045_s0, 128 }
   0x3   :  { %s23_s14 = sshll.u32 %s2277_s13, 4  ;;  %p2206_p0 = scmp.ne.s32.totalorder %s3045_s0, %s2205_s17  ;;  %s24_s14 = int_to_ptr.vmem [resolvable:$true] %s23_s14 }
   0x4   :  { %p2209_p1 = scmp.lt.u32.totalorder %s2205_s17, %s3045_s0 }
   0x6   :  { %p2211_p2 = pnand %p2209_p1, %p2206_p0 }
   0x8   :  { %2214 = shalt.err (!%p2211_p2)
}
   0x9   :  { %s2215_s22 = scalar_lea.vmem %s24_s14, 128  ;;  %p2220_p4 = scmp.lt.s32.totalorder %s24_s14, %s24_s14 }
   0xa   :  { %p2216_p3 = scmp.ne.s32.totalorder %s24_s14, %s2215_s22  ;;  %p2221_p5 = scmp.lt.s32.totalorder %s2215_s22, %s2215_s22 }
   0xc   :  { %p2222_p6 = por %p2221_p5, %p2220_p4 }
   0xe   :  { %p2223_p7 = pnand %p2222_p6, %p2216_p3 }
  0x10   :  { %2226 = shalt.err (!%p2223_p7)
}
  0x11   :  { %s2278_s23 = smov 64   ;;  %s2279_s24 = smov 4  }
  0x12   :  { %29 = dma.hbm_to_vmem [thread:$0]  %s3045_s0, 128, %s24_s14, [#allocation3], %s2278_s23, %s2278_s23, %s2279_s24  }
  0x13   :  { %s2280_s27 = smov [#allocation5]   ;;  %s2227_s11 = scalar_lea.hbm %s3048_s3, 64 }
  0x14   :  { %s40_s28 = sshll.u32 %s2280_s27, 4  ;;  %p2228_p8 = scmp.ne.s32.totalorder %s3048_s3, %s2227_s11  ;;  %s41_s28 = int_to_ptr.vmem [resolvable:$true] %s40_s28 }
  0x15   :  { %p2231_p9 = scmp.lt.u32.totalorder %s2227_s11, %s3048_s3 }
  0x17   :  { %p2233_p10 = pnand %p2231_p9, %p2228_p8 }
  0x19   :  { %2236 = shalt.err (!%p2233_p10)
}
  0x1a   :  { %s2237_s17 = scalar_lea.vmem %s41_s28, 64  ;;  %p2242_p12 = scmp.lt.s32.totalorder %s41_s28, %s41_s28 }
  0x1b   :  { %p2238_p11 = scmp.ne.s32.totalorder %s41_s28, %s2237_s17  ;;  %p2243_p13 = scmp.lt.s32.totalorder %s2237_s17, %s2237_s17 }
  0x1d   :  { %p2244_p0 = por %p2243_p13, %p2242_p12 }
  0x1f   :  { %p2245_p1 = pnand %p2244_p0, %p2238_p11 }
  0x21   :  { %2248 = shalt.err (!%p2245_p1)
}
  0x22   :  { %43 = dma.hbm_to_vmem [thread:$0]  %s3048_s3, 64, %s41_s28, [#allocation6]  }
  0x23   :  { %2271 = dma.done.wait [#allocation3], 128  }
  0x24   :  { %2272 = vsyncadd [#allocation3], 4294967168 }
  0x25   :  { %2273 = dma.done.wait [#allocation6], 64  }
  0x26   :  { %2274 = vsyncadd [#allocation6], 4294967232  ;;  %v76_v0 = vld [vmem:[#allocation2] sm:$0xf]  ;;  %v78_v1 = vld [vmem:[#allocation2 + $0x4] sm:$0xf] }
  0x27   :  { %v2281_v2 = vmov 0.0   ;;  %s2282_s18 = smov 127   ;;  %s2283_s19 = smov 107   ;;  %v2284_v3 = vmov 0   ;;  %v2386_v4 = vld [vmem:[%s3047_s2] sm:$0xff]  ;;  %vm83_vm0 = vcmask 875520  }
  0x28   :  { %186 = vmatprep.mubr.f32.mxu1 %v2281_v2  ;;  %86 = vrot.lane.b32.xlu0 %v76_v0, %s2282_s18  ;;  %s2285_s20 = smov 106   ;;  %s2286_s21 = smov 126   ;;  %vm105_vm1 = vcmask 1043456   ;;  %vm2288_vm2 = vmmov 1   ;;  %v69_v20 = vld [vmem:[%s3046_s1] sm:$0xff]  ;;  %vm113_vm4 = vcmask 97280  }
  0x29   :  { %80 = vrot.lane.b32.xlu1 %v78_v1, %s2283_s19  ;;  %s2287_s23 = smov 105   ;;  %vm2389_vm3 = vmpackc.low %vm105_vm1, %vm2288_vm2  ;;  %vm193_vm5 = vcmask 703488   ;;  %v2289_v36 = vmov 1   ;;  %v2290_v37 = vmov 2   ;;  %s2291_s26 = smov 125   ;;  %v2292_v52 = vmov 3  }
  0x2a   :  { %2153 = vset.pattern.permute.xlu1 %v2284_v3  ;;  %2154 = vset.pattern.permute.xlu0 %v2289_v36  ;;  %s2293_s27 = smov 124   ;;  %v2413_v53 = vld [vmem:[%s3047_s2 + $0x8] sm:$0xff]  ;;  %vm232_vm6 = vcmask 1031168   ;;  %vm245_vm7 = vcmask 1022976   ;;  %vm236_vm8 = vcmask 859136   ;;  %vm255_vm9 = vcmask 1014784  }
  0x2b   :  { %vm269_vm10 = vcmask 195584   ;;  %vm353_vm11 = vcmask 670720   ;;  %vm430_vm12 = vcmask 1039360   ;;  %vm485_vm13 = vcmask 654336   ;;  %s2300_s0 = smov [#allocation7]  }
  0x2c   :  { %89 = vrot.lane.b32.xlu0 %v78_v1, %s2285_s20  ;;  %vm618_vm14 = vcmask 392192   ;;  %vm575_vm15 = vcmask 269312   ;;  %vm904_vm2 = vcmask 179200   ;;  %s1692_s14 = sshll.u32 %s2300_s0, 4  ;;  %s1693_s14 = int_to_ptr.vmem [resolvable:$true] %s1692_s14 }
  0x2d   :  { %93 = vrot.lane.b32.xlu1 %v76_v0, %s2286_s21  ;;  %p2254_p3 = scmp.lt.s32.totalorder %s1693_s14, %s1693_s14 }
  0x30   :  { %96 = vrot.lane.b32.xlu0 %v78_v1, %s2287_s23 }
  0x31   :  { %110 = vperm.xlu1 %2153, %v2386_v4  }
  0x35   :  { %2155 = vset.pattern.permute.xlu1 %v2290_v37 }
  0x9a   :  { %v87_v5 = vpop.permute.xlu0 %86 }
  0x9b   :  { %v81_v6 = vpop.permute.xlu1 %80 }
  0x9c   :  { %v84_v12 = vsel %vm83_vm0, %v76_v0, %v81_v6 }
  0x9e   :  { %v90_v7 = vpop.permute.xlu0 %89 }
  0x9f   :  { %v92_v8 = vsel %vm83_vm0, %v87_v5, %v90_v7  ;;  %v102_v9 = vrot.slane %v90_v7, 4  ;;  %v94_v11 = vpop.permute.xlu1 %93  ;;  %v70_v7 = vld [vmem:[%s3046_s1 + $0x8] sm:$0xff] }
  0xa0   :  { %v101_v10 = vrot.slane %v92_v8, 4 }
  0xa1   :  { %v107_v13 = vsel %vm105_vm1, %v81_v6, %v102_v9  ;;  %v71_v9 = vld [vmem:[%s3046_s1 + $0x10] sm:$0xff] }
  0xa2   :  { %v97_v14 = vpop.permute.xlu0 %96  ;;  %v106_v15 = vsel %vm105_vm1, %v84_v12, %v101_v10  ;;  %vm917_vm1 = vcmask 1045504  }
  0xa3   :  { %v99_v17 = vsel %vm83_vm0, %v94_v11, %v97_v14  ;;  %v1956_v18 = vpack.c.bf16 %v97_v14, %v107_v13  ;;  %vm764_vm0 = vcmask 523264  }
  0xa4   :  { %v1959_v19 = vpack.c.bf16 %v99_v17, %v106_v15 }
  0xa5   :  { %1958 = vmatprep.subr.msk.bf16.mxu1 %vm2389_vm3, %v1956_v18 }
  0xa6   :  { %1961 = vmatpush1.bf16.msk.msra.mxu1 %vm2389_vm3, %v1959_v19 }
  0xa9   :  { %1704 = vmatmul.mubr.msk.f32.vlgmr.msra.gmra.mrb[0].mxu1 %vm113_vm4, %v69_v20  ;;  %vm2299_vm4 = vmmov 0  }
  0xaa   :  { %340 = vmatprep.mubr.f32.mxu1 %v2281_v2 }
  0xb0   :  { %v111_v21 = vpop.permute.xlu1 %110 }
 0x17c   :  { %v188_v22 = vpop.f32.mrb[0].mxu1 }
 0x17d   :  { %v190_v23 = vpop.f32.mrb[1].mxu1  ;;  %v189_v25 = vadd.f32 %v188_v22, %v111_v21 }
 0x17e   :  { %v191_v24 = vadd.f32 %v190_v23, %v111_v21 }
 0x180   :  { %v194_v26 = vsel %vm193_vm5, %v191_v24, 0.0 }
 0x181   :  { %v195_v27 = vadd.f32 %v194_v26, %v189_v25 }
 0x183   :  { %196 = vadd.xlane.f32.xlu0 %v195_v27 }
 0x210   :  { %v197_v28 = vpop.xlane.xlu0 %196 }
 0x211   :  { %v198_v29 = vmul.f32 0.004672897, %v197_v28 }
 0x213   :  { %v199_v30 = vsub.f32 %v189_v25, %v198_v29  ;;  %v200_v31 = vsub.f32 %v191_v24, %v198_v29 }
 0x215   :  { %v201_v32 = vmul.f32 %v199_v30, %v199_v30  ;;  %v202_v33 = vmul.f32 %v200_v31, %v200_v31 }
 0x217   :  { %v203_v34 = vsel %vm193_vm5, %v202_v33, 0.0  ;;  %vm1297_vm5 = vcmask 261120  }
 0x218   :  { %v204_v35 = vadd.f32 %v203_v34, %v201_v32 }
 0x21a   :  { %205 = vadd.xlane.f32.xlu1 %v204_v35 }
 0x22b   :  { %219 = vperm.xlu1 %2155, %v2386_v4  }
 0x22f   :  { %2162 = vset.pattern.permute.xlu1 %v2292_v52 }
 0x2a7   :  { %v206_v38 = vpop.xlane.xlu1 %205 }
 0x2a8   :  { %v207_v39 = vmul.f32 0.004672897, %v206_v38 }
 0x2aa   :  { %v208_v40 = vadd.f32 1e-05, %v207_v39 }
 0x2ab   :  { %v220_v44 = vpop.permute.xlu1 %219 }
 0x2ac   :  { %2199 = vrsqrt.f32 %v208_v40 }
 0x2b6   :  { %v2200_v41 = vpop.eup %2199 }
 0x2b7   :  { %v210_v42 = vmul.f32 %v2200_v41, %v2386_v4  ;;  %v2294_v41 = vmov 5  }
 0x2b9   :  { %213 = vperm.xlu0 %2154, %v210_v42   ;;  %v2295_v42 = vmov 4  }
 0x2bd   :  { %2161 = vset.pattern.permute.xlu0 %v2292_v52 }
 0x2be   :  { %261 = vperm.xlu0 %2161, %v2386_v4  }
 0x2c2   :  { %2163 = vset.pattern.permute.xlu0 %v2295_v42 }
 0x338   :  { %v214_v43 = vpop.permute.xlu0 %213 }
 0x339   :  { %v216_v45 = vmul.f32 %v214_v43, %v199_v30  ;;  %v217_v46 = vmul.f32 %v214_v43, %v200_v31 }
 0x33b   :  { %v222_v47 = vadd.f32 %v220_v44, %v216_v45  ;;  %v223_v48 = vadd.f32 %v220_v44, %v217_v46 }
 0x33d   :  { %v224_v49 = vmax.f32 %v222_v47, 0.0  ;;  %v225_v50 = vmax.f32 %v223_v48, 0.0  ;;  %v262_v10 = vpop.permute.xlu0 %261 }
 0x33f   :  { %228 = vrot.lane.b32.xlu1 %v224_v49, %s2286_s21  ;;  %v2156_v51 = vpack.i.bf16 %v225_v50, %v224_v49 }
 0x343   :  { %230 = vrot.lane.b32.xlu1 %v225_v50, %s2286_s21 }
 0x347   :  { %2157 = vrot.lane.b32.xlu1 %v2156_v51, %s2291_s26 }
 0x34b   :  { %238 = vrot.lane.b32.xlu1 %v224_v49, %s2282_s18 }
 0x34f   :  { %251 = vrot.lane.b32.xlu1 %v224_v49, %s2293_s27 }
 0x353   :  { %253 = vrot.lane.b32.xlu1 %v225_v50, %s2293_s27 }
 0x357   :  { %266 = vperm.xlu1 %2162, %v2413_v53  }
 0x35b   :  { %2164 = vset.pattern.permute.xlu1 %v2294_v41 }
 0x3b1   :  { %v229_v54 = vpop.permute.xlu1 %228 }
 0x3b5   :  { %v231_v55 = vpop.permute.xlu1 %230 }
 0x3b6   :  { %v233_v59 = vsel %vm232_vm6, %v229_v54, %v231_v55 }
 0x3b7   :  { %v237_v63 = vsel %vm236_vm8, %v224_v49, %v233_v59  ;;  %v462_v59 = vld [vmem:[%s3049_s4 + $0x18] sm:$0xff] }
 0x3b9   :  { %v2158_v56 = vpop.permute.xlu1 %2157 }
 0x3ba   :  { %v2160_v57 = vunpack.i.h.bf16 %v2158_v56  ;;  %v2159_v58 = vunpack.i.l.bf16 %v2158_v56  ;;  %v461_v56 = vld [vmem:[%s3049_s4 + $0x10] sm:$0xff] }
 0x3bc   :  { %v1962_v60 = vpack.c.bf16 %v2160_v57, %v231_v55  ;;  %v246_v61 = vsel %vm245_vm7, %v2159_v58, %v2160_v57  ;;  %v460_v55 = vld [vmem:[%s3049_s4 + $0x8] sm:$0xff]  ;;  %v2296_v57 = vmov 0.0|0.0   ;;  %vm1356_vm7 = vcmask 785408  }
 0x3bd   :  { %v239_v62 = vpop.permute.xlu1 %238  ;;  %1966 = vmatprep.subr.bf16.mxu0 %v2296_v57 }
 0x3be   :  { %v249_v0 = vsel %vm236_vm8, %v239_v62, %v246_v61  ;;  %1963 = vmatprep.subr.bf16.mxu1 %v1962_v60  ;;  %v1970_v60 = vpack.c.bf16 %v462_v59, %v461_v56  ;;  %v463_v61 = vld [vmem:[%s3049_s4 + $0x20] sm:$0xff]  ;;  %v464_v62 = vld [vmem:[%s3049_s4 + $0x28] sm:$0xff] }
 0x3bf   :  { %v1964_v1 = vpack.c.bf16 %v249_v0, %v237_v63  ;;  %v1973_v63 = vpack.c.bf16 %v464_v62, %v463_v61  ;;  %v465_v0 = vld [vmem:[%s3049_s4 + $0x30] sm:$0xff] }
 0x3c1   :  { %v252_v3 = vpop.permute.xlu1 %251  ;;  %1965 = vmatpush1.bf16.msra.mxu1 %v1964_v1  ;;  %v466_v1 = vld [vmem:[%s3049_s4 + $0x38] sm:$0xff] }
 0x3c5   :  { %v254_v5 = vpop.permute.xlu1 %253 }
 0x3c6   :  { %v256_v6 = vsel %vm255_vm9, %v252_v3, %v254_v5  ;;  %280 = vmatprep.subr.mxu1 %v254_v5  ;;  %v1976_v3 = vpack.c.bf16 %v466_v1, %v465_v0  ;;  %v467_v5 = vld [vmem:[%s3049_s4 + $0x40] sm:$0xff]  ;;  %vm1607_vm9 = vcmask 490496  }
 0x3c7   :  { %v259_v8 = vsel %vm236_vm8, %v229_v54, %v256_v6  ;;  %v459_v54 = vld [vmem:[%s3049_s4] sm:$0xff]  ;;  %v468_v6 = vld [vmem:[%s3049_s4 + $0x48] sm:$0xff]  ;;  %vm1520_vm8 = vcmask 982016  }
 0x3c8   :  { %281 = vmatpush1.msra.mxu1 %v259_v8  ;;  %v1967_v58 = vpack.c.bf16 %v460_v55, %v459_v54  ;;  %v469_v8 = vld [vmem:[%s3049_s4 + $0x50] sm:$0xff] }
 0x3c9   :  { %1705 = vmatmul.mubr.msk.f32.vlgmr.msra.gmra.mrb[2].mxu1 %vm269_vm10, %v70_v7  ;;  %v1979_v7 = vpack.c.bf16 %v468_v6, %v467_v5 }
 0x3ca   :  { %346 = vmatprep.mubr.f32.mxu1 %v2281_v2  ;;  %1968 = vmatpush1.bf16.msra.mxu0 %v1967_v58 }
 0x3cb   :  { %1969 = vmatprep.subr.bf16.mxu0 %v2296_v57 }
 0x3cd   :  { %1706 = vmatmul.mubr.msk.f32.gmra.mrb[4].mxu1 %vm269_vm10, %v71_v9  ;;  %v470_v9 = vld [vmem:[%s3049_s4 + $0x58] sm:$0xff]  ;;  %vm1684_vm10 = vcmask 33792  }
 0x3ce   :  { %1971 = vmatpush1.bf16.msra.mxu0 %v1970_v60 }
 0x3cf   :  { %1972 = vmatprep.subr.bf16.mxu0 %v2296_v57 }
 0x3d2   :  { %1974 = vmatpush1.bf16.msra.mxu0 %v1973_v63 }
 0x3d3   :  { %1975 = vmatprep.subr.bf16.mxu0 %v2296_v57 }
 0x3d6   :  { %v267_v15 = vpop.permute.xlu1 %266  ;;  %1977 = vmatpush1.bf16.msra.mxu0 %v1976_v3 }
 0x3d7   :  { %1978 = vmatprep.subr.bf16.mxu0 %v2296_v57 }
 0x3da   :  { %1980 = vmatpush1.bf16.msra.mxu0 %v1979_v7 }
 0x3db   :  { %1981 = vmatprep.subr.bf16.mxu0 %v2296_v57 }
 0x49c   :  { %v342_v11 = vpop.f32.mrb[2].mxu1 }
 0x49d   :  { %v344_v12 = vpop.f32.mrb[3].mxu1  ;;  %v343_v14 = vadd.f32 %v342_v11, %v262_v10  ;;  %v471_v11 = vld [vmem:[%s3049_s4 + $0x60] sm:$0xff] }
 0x49e   :  { %v345_v13 = vadd.f32 %v344_v12, %v262_v10  ;;  %v1982_v10 = vpack.c.bf16 %v470_v9, %v469_v8  ;;  %v472_v12 = vld [vmem:[%s3049_s4 + $0x68] sm:$0xff] }
 0x4a0   :  { %v348_v17 = vpop.f32.mrb[4].mxu1  ;;  %v354_v18 = vsel %vm353_vm11, %v345_v13, 0.0  ;;  %1983 = vmatpush1.bf16.msra.mxu0 %v1982_v10 }
 0x4a1   :  { %v350_v19 = vpop.f32.mrb[5].mxu1  ;;  %v355_v20 = vadd.f32 %v354_v18, %v343_v14  ;;  %v349_v22 = vadd.f32 %v348_v17, %v267_v15  ;;  %1984 = vmatprep.subr.bf16.mxu0 %v2296_v57  ;;  %v475_v18 = vld [vmem:[%s3049_s4 + $0x80] sm:$0xff] }
 0x4a2   :  { %v351_v21 = vadd.f32 %v350_v19, %v267_v15  ;;  %v474_v15 = vld [vmem:[%s3049_s4 + $0x78] sm:$0xff]  ;;  %v476_v19 = vld [vmem:[%s3049_s4 + $0x88] sm:$0xff] }
 0x4a3   :  { %356 = vadd.xlane.f32.xlu1 %v355_v20  ;;  %v1991_v20 = vpack.c.bf16 %v476_v19, %v475_v18  ;;  %v2297_v18 = vmov 6   ;;  %v64_v19 = vld [vmem:[%s3047_s2 + $0x10] sm:$0xff] }
 0x4a4   :  { %v358_v23 = vsel %vm353_vm11, %v351_v21, 0.0 }
 0x4a5   :  { %v359_v24 = vadd.f32 %v358_v23, %v349_v22 }
 0x4a7   :  { %360 = vadd.xlane.f32.xlu0 %v359_v24  ;;  %v479_v24 = vld [vmem:[%s3049_s4 + $0xa0] sm:$0xff] }
 0x530   :  { %v357_v25 = vpop.xlane.xlu1 %356 }
 0x531   :  { %v362_v26 = vmul.f32 0.004761905, %v357_v25  ;;  %v480_v25 = vld [vmem:[%s3049_s4 + $0xa8] sm:$0xff] }
 0x533   :  { %v2429_v27 = vsub.f32 %v343_v14, %v362_v26  ;;  %v2431_v28 = vsub.f32 %v345_v13, %v362_v26  ;;  %v1985_v13 = vpack.c.bf16 %v472_v12, %v471_v11  ;;  %v473_v14 = vld [vmem:[%s3049_s4 + $0x70] sm:$0xff]  ;;  %v1997_v26 = vpack.c.bf16 %v480_v25, %v479_v24 }
 0x534   :  { %v361_v29 = vpop.xlane.xlu0 %360  ;;  %v1988_v17 = vpack.c.bf16 %v474_v15, %v473_v14 }
 0x535   :  { %v363_v30 = vmul.f32 0.004761905, %v361_v29  ;;  %v368_v31 = vmul.f32 %v2429_v27, %v2429_v27  ;;  %v369_v32 = vmul.f32 %v2431_v28, %v2431_v28  ;;  %1986 = vmatpush1.bf16.msra.mxu0 %v1985_v13 }
 0x536   :  { %1987 = vmatprep.subr.bf16.mxu0 %v2296_v57 }
 0x537   :  { %v2437_v33 = vsub.f32 %v349_v22, %v363_v30  ;;  %v2439_v34 = vsub.f32 %v351_v21, %v363_v30  ;;  %v372_v35 = vsel %vm353_vm11, %v369_v32, 0.0  ;;  %v477_v21 = vld [vmem:[%s3049_s4 + $0x90] sm:$0xff]  ;;  %v478_v22 = vld [vmem:[%s3049_s4 + $0x98] sm:$0xff] }
 0x538   :  { %v373_v36 = vadd.f32 %v372_v35, %v368_v31  ;;  %v1994_v23 = vpack.c.bf16 %v478_v22, %v477_v21  ;;  %v481_v31 = vld [vmem:[%s3049_s4 + $0xb0] sm:$0xff]  ;;  %v482_v32 = vld [vmem:[%s3049_s4 + $0xb8] sm:$0xff] }
 0x539   :  { %v370_v37 = vmul.f32 %v2437_v33, %v2437_v33  ;;  %v371_v38 = vmul.f32 %v2439_v34, %v2439_v34  ;;  %1989 = vmatpush1.bf16.msra.mxu0 %v1988_v17  ;;  %v72_v17 = vld [vmem:[%s3046_s1 + $0x18] sm:$0xff] }
 0x53a   :  { %374 = vadd.xlane.f32.xlu0 %v373_v36  ;;  %1990 = vmatprep.subr.bf16.mxu0 %v2296_v57 }
 0x53b   :  { %v376_v39 = vsel %vm353_vm11, %v371_v38, 0.0  ;;  %1849 = vmatprep.mubr.msk.f32.mxu1 %vm618_vm14, %v72_v17  ;;  %v872_v17 = vld [vmem:[%s3051_s6 + $0x50] sm:$0xff] }
 0x53c   :  { %v377_v40 = vadd.f32 %v376_v39, %v370_v37  ;;  %v2000_v37 = vpack.c.bf16 %v482_v32, %v481_v31 }
 0x53d   :  { %1992 = vmatpush1.bf16.msra.mxu0 %v1991_v20  ;;  %v65_v20 = vld [vmem:[%s3047_s2 + $0x18] sm:$0xff] }
 0x53e   :  { %378 = vadd.xlane.f32.xlu1 %v377_v40  ;;  %1993 = vmatprep.subr.bf16.mxu0 %v2296_v57  ;;  %v483_v40 = vld [vmem:[%s3049_s4 + $0xc0] sm:$0xff] }
 0x541   :  { %1995 = vmatpush1.bf16.msra.mxu0 %v1994_v23 }
 0x542   :  { %1996 = vmatprep.subr.bf16.mxu0 %v2296_v57 }
 0x545   :  { %1998 = vmatpush1.bf16.msra.mxu0 %v1997_v26 }
 0x546   :  { %1999 = vmatprep.subr.bf16.mxu0 %v2296_v57 }
 0x549   :  { %2001 = vmatpush1.bf16.msra.mxu0 %v2000_v37 }
 0x54a   :  { %2002 = vmatprep.subr.bf16.mxu0 %v2296_v57 }
 0x54f   :  { %403 = vperm.xlu1 %2164, %v2386_v4  }
 0x553   :  { %2165 = vset.pattern.permute.xlu1 %v2295_v42 }
 0x5c7   :  { %v375_v43 = vpop.xlane.xlu0 %374 }
 0x5c8   :  { %v380_v44 = vmul.f32 0.004761905, %v375_v43 }
 0x5ca   :  { %v382_v45 = vadd.f32 1e-05, %v380_v44 }
 0x5cb   :  { %v379_v46 = vpop.xlane.xlu1 %378 }
 0x5cc   :  { %2201 = vrsqrt.f32 %v382_v45  ;;  %v381_v47 = vmul.f32 0.004761905, %v379_v46 }
 0x5ce   :  { %v383_v48 = vadd.f32 1e-05, %v381_v47 }
 0x5cf   :  { %v404_v29 = vpop.permute.xlu1 %403 }
 0x5d0   :  { %2203 = vrsqrt.f32 %v383_v48 }
 0x5d6   :  { %v2202_v49 = vpop.eup %2201 }
 0x5d7   :  { %v386_v50 = vmul.f32 %v2202_v49, %v2386_v4 }
 0x5d9   :  { %390 = vperm.xlu0 %2163, %v386_v50  }
 0x5da   :  { %v2204_v51 = vpop.eup %2203 }
 0x5db   :  { %v387_v52 = vmul.f32 %v2204_v51, %v2413_v53 }
 0x5dd   :  { %395 = vperm.xlu1 %2165, %v387_v52   ;;  %2193 = vset.pattern.permute.xlu0 %v2297_v18 }
 0x5e1   :  { %2166 = vset.pattern.permute.xlu1 %v2294_v41  ;;  %v484_v41 = vld [vmem:[%s3049_s4 + $0xc8] sm:$0xff] }
 0x5e2   :  { %407 = vperm.xlu1 %2166, %v2413_v53   ;;  %v2003_v44 = vpack.c.bf16 %v484_v41, %v483_v40 }
 0x5e4   :  { %2004 = vmatpush1.bf16.msra.mxu0 %v2003_v44  ;;  %v73_v44 = vld [vmem:[%s3046_s1 + $0x20] sm:$0xff] }
 0x5e6   :  { %2192 = vset.pattern.permute.xlu1 %v2297_v18 }
 0x658   :  { %v391_v30 = vpop.permute.xlu0 %390 }
 0x659   :  { %v398_v35 = vmul.f32 %v391_v30, %v2429_v27  ;;  %v399_v36 = vmul.f32 %v391_v30, %v2431_v28 }
 0x65b   :  { %v411_v38 = vadd.f32 %v404_v29, %v399_v36  ;;  %v410_v42 = vadd.f32 %v404_v29, %v398_v35 }
 0x65c   :  { %v396_v39 = vpop.permute.xlu1 %395 }
 0x65d   :  { %v415_v43 = vmax.f32 %v411_v38, 0.0  ;;  %v400_v27 = vmul.f32 %v396_v39, %v2437_v33  ;;  %v401_v28 = vmul.f32 %v396_v39, %v2439_v34  ;;  %v414_v45 = vmax.f32 %v410_v42, 0.0 }
 0x65f   :  { %424 = vrot.lane.b32.xlu1 %v415_v43, %s2282_s18 }
 0x661   :  { %v408_v46 = vpop.permute.xlu1 %407 }
 0x662   :  { %v412_v47 = vadd.f32 %v408_v46, %v400_v27  ;;  %v413_v48 = vadd.f32 %v408_v46, %v401_v28  ;;  %v74_v27 = vld [vmem:[%s3046_s1 + $0x28] sm:$0xff]  ;;  %v75_v28 = vld [vmem:[%s3046_s1 + $0x30] sm:$0xff] }
 0x663   :  { %441 = vrot.lane.b32.xlu1 %v414_v45, %s2286_s21  ;;  %v757_v46 = vld [vmem:[%s3050_s5 + $0x8] sm:$0xff] }
 0x664   :  { %v416_v49 = vmax.f32 %v412_v47, 0.0  ;;  %v417_v50 = vmax.f32 %v413_v48, 0.0  ;;  %v758_v47 = vld [vmem:[%s3050_s5 + $0x10] sm:$0xff] }
 0x666   :  { %428 = vrot.lane.b32.xlu0 %v417_v50, %s2282_s18  ;;  %v2167_v51 = vpack.i.bf16 %v416_v49, %v414_v45 }
 0x668   :  { %2168 = vrot.lane.b32.xlu1 %v2167_v51, %s2282_s18  ;;  %v760_v51 = vld [vmem:[%s3050_s5 + $0x20] sm:$0xff] }
 0x66a   :  { %447 = vrot.lane.b32.xlu0 %v417_v50, %s2286_s21 }
 0x66c   :  { %443 = vrot.lane.b32.xlu1 %v415_v43, %s2286_s21 }
 0x670   :  { %445 = vrot.lane.b32.xlu1 %v416_v49, %s2286_s21 }
 0x6d1   :  { %v425_v33 = vpop.permute.xlu1 %424 }
 0x6d2   :  { %v438_v58 = vmax.f32 %v415_v43, %v425_v33 }
 0x6d5   :  { %v442_v34 = vpop.permute.xlu1 %441 }
 0x6d8   :  { %v429_v52 = vpop.permute.xlu0 %428 }
 0x6d9   :  { %v440_v63 = vmax.f32 %v417_v50, %v429_v52 }
 0x6da   :  { %v2169_v54 = vpop.permute.xlu1 %2168 }
 0x6db   :  { %v2171_v55 = vunpack.i.h.bf16 %v2169_v54  ;;  %v2170_v56 = vunpack.i.l.bf16 %v2169_v54  ;;  %v763_v54 = vld [vmem:[%s3050_s5 + $0x38] sm:$0xff] }
 0x6dc   :  { %v448_v60 = vpop.permute.xlu0 %447 }
 0x6dd   :  { %v431_v59 = vsel %vm430_vm12, %v2170_v56, %v425_v33  ;;  %v432_v3 = vsel %vm430_vm12, %v2171_v55, %v429_v52  ;;  %v458_v6 = vmax.f32 %v440_v63, %v448_v60  ;;  %v761_v33 = vld [vmem:[%s3050_s5 + $0x28] sm:$0xff]  ;;  %v762_v52 = vld [vmem:[%s3050_s5 + $0x30] sm:$0xff] }
 0x6de   :  { %v444_v61 = vpop.permute.xlu1 %443  ;;  %v437_v62 = vmax.f32 %v414_v45, %v431_v59  ;;  %v439_v8 = vmax.f32 %v416_v49, %v432_v3  ;;  %v756_v45 = vld [vmem:[%s3050_s5] sm:$0xff]  ;;  %v759_v49 = vld [vmem:[%s3050_s5 + $0x18] sm:$0xff]  ;;  %v2029_v56 = vpack.c.bf16 %v763_v54, %v762_v52 }
 0x6df   :  { %v449_v0 = vsel %vm232_vm6, %v442_v34, %v444_v61  ;;  %v456_v1 = vmax.f32 %v438_v58, %v444_v61  ;;  %v2017_v48 = vpack.c.bf16 %v757_v46, %v756_v45  ;;  %v2021_v50 = vpack.c.bf16 %v759_v49, %v758_v47  ;;  %v871_v45 = vld [vmem:[%s3051_s6 + $0x48] sm:$0xff]  ;;  %v864_v47 = vld [vmem:[%s3051_s6 + $0x10] sm:$0xff] }
 0x6e0   :  { %v455_v5 = vmax.f32 %v437_v62, %v449_v0  ;;  %v2025_v34 = vpack.c.bf16 %v761_v33, %v760_v51  ;;  %v877_v33 = vld [vmem:[%s3051_s6 + $0x78] sm:$0x3f] }
 0x6e1   :  { %1707 = vmatprep.mubr.msk.f32.mxu0 %vm485_vm13, %v456_v1 }
 0x6e2   :  { %v446_v7 = vpop.permute.xlu1 %445  ;;  %557 = vmatmul.mubr.f32.vlgmr.msra.gmra.mrb[0].mxu0 %v455_v5 }
 0x6e3   :  { %v450_v9 = vsel %vm232_vm6, %v446_v7, %v448_v60  ;;  %1708 = vmatprep.mubr.msk.f32.mxu0 %vm485_vm13, %v458_v6  ;;  %vm1304_vm6 = vcmask 1040384  }
 0x6e4   :  { %v457_v10 = vmax.f32 %v439_v8, %v450_v9  ;;  %v863_v9 = vld [vmem:[%s3051_s6 + $0x8] sm:$0xff] }
 0x6e6   :  { %562 = vmatmul.mubr.f32.gmra.mrb[2].mxu0 %v457_v10  ;;  %v869_v10 = vld [vmem:[%s3051_s6 + $0x38] sm:$0xff] }
 0x6e7   :  { %1178 = vmatprep.mubr.f32.mxu0 %v2281_v2 }
 0x7b5   :  { %v558_v11 = vpop.f32.mrb[0].mxu0 }
 0x7b6   :  { %v560_v12 = vpop.f32.mrb[1].mxu0 }
 0x7b7   :  { %v867_v12 = vld [vmem:[%s3051_s6 + $0x28] sm:$0xff] }
 0x7b9   :  { %v563_v13 = vpop.f32.mrb[2].mxu0 }
 0x7ba   :  { %v565_v14 = vpop.f32.mrb[3].mxu0  ;;  %v2177_v15 = vpack.i.bf16 %v563_v13, %v558_v11 }
 0x7bc   :  { %2178 = vrot.lane.b32.xlu0 %v2177_v15, %s2282_s18  ;;  %2173 = vrot.lane.b32.xlu1 %v2177_v15, %s2286_s21 }
 0x7c0   :  { %2188 = vrot.lane.b32.xlu0 %v2177_v15, %s2293_s27  ;;  %2183 = vrot.lane.b32.xlu1 %v2177_v15, %s2291_s26  ;;  %v866_v15 = vld [vmem:[%s3051_s6 + $0x20] sm:$0xff]  ;;  %s2298_s27 = smov 32  }
 0x7c4   :  { %601 = vperm.xlu1 %2192, %v2386_v4   ;;  %605 = vperm.xlu0 %2193, %v2413_v53  }
 0x7c8   :  { %610 = vperm.xlu1 %2192, %v64_v19   ;;  %v2043_v19 = vpack.c.bf16 %v872_v17, %v866_v15  ;;  %v881_v15 = vld [vmem:[%s3051_s6 + $0x98] sm:$0xff]  ;;  %v887_v17 = vld [vmem:[%s3051_s6 + $0xc8] sm:$0xff] }
 0x7cc   :  { %615 = vperm.xlu1 %2192, %v65_v20  }
 0x82e   :  { %v2179_v21 = vpop.permute.xlu0 %2178  ;;  %v2174_v22 = vpop.permute.xlu1 %2173 }
 0x82f   :  { %v2176_v23 = vunpack.i.h.bf16 %v2174_v22  ;;  %v2175_v24 = vunpack.i.l.bf16 %v2174_v22  ;;  %v2181_v53 = vunpack.i.h.bf16 %v2179_v21  ;;  %v2180_v26 = vunpack.i.l.bf16 %v2179_v21 }
 0x831   :  { %v576_v25 = vsel %vm575_vm15, %v558_v11, %v2175_v24  ;;  %v577_v4 = vsel %vm575_vm15, %v563_v13, %v2176_v23  ;;  %v2033_v11 = vpack.c.bf16 %v869_v10, %v863_v9  ;;  %v873_v13 = vld [vmem:[%s3051_s6 + $0x58] sm:$0xff] }
 0x832   :  { %v2189_v29 = vpop.permute.xlu0 %2188  ;;  %v2184_v30 = vpop.permute.xlu1 %2183  ;;  %v2005_v31 = vpack.c.bf16 %v577_v4, %v576_v25  ;;  %v2041_v14 = vpack.c.bf16 %v873_v13, %v867_v12  ;;  %v885_v10 = vld [vmem:[%s3051_s6 + $0xb8] sm:$0xff]  ;;  %v884_v12 = vld [vmem:[%s3051_s6 + $0xb0] sm:$0xff]  ;;  %v886_v13 = vld [vmem:[%s3051_s6 + $0xc0] sm:$0xff] }
 0x833   :  { %v2191_v32 = vunpack.i.h.bf16 %v2189_v29  ;;  %v2190_v35 = vunpack.i.l.bf16 %v2189_v29  ;;  %v2186_v36 = vunpack.i.h.bf16 %v2184_v30  ;;  %v2185_v37 = vunpack.i.l.bf16 %v2184_v30 }
 0x834   :  { %2006 = vmatprep.subr.bf16.mxu1 %v2005_v31  ;;  %2042 = vmatprep.subr.bf16.mxu0 %v2041_v14  ;;  %v890_v14 = vld [vmem:[%s3051_s6 + $0xe0] sm:$0xff] }
 0x835   :  { %2008 = vmatpush3.bf16.msra.mxu1 %v2005_v31  ;;  %v590_v38 = vsel %vm575_vm15, %v2180_v26, %v2185_v37  ;;  %v591_v39 = vsel %vm575_vm15, %v2181_v53, %v2186_v36  ;;  %v598_v40 = vsel %vm575_vm15, %v2175_v24, %v2190_v35  ;;  %v599_v41 = vsel %vm575_vm15, %v2176_v23, %v2191_v32  ;;  %v862_v23 = vld [vmem:[%s3051_s6] sm:$0xff]  ;;  %v868_v24 = vld [vmem:[%s3051_s6 + $0x30] sm:$0xff]  ;;  %v875_v35 = vld [vmem:[%s3051_s6 + $0x68] sm:$0x3f] }
 0x836   :  { %v2009_v42 = vpack.c.bf16 %v591_v39, %v590_v38  ;;  %v2013_v43 = vpack.c.bf16 %v599_v41, %v598_v40  ;;  %2044 = vmatpush1.bf16.msra.mxu0 %v2043_v19  ;;  %v2035_v30 = vpack.c.bf16 %v868_v24, %v862_v23  ;;  %v874_v37 = vld [vmem:[%s3051_s6 + $0x60] sm:$0x3f] }
 0x838   :  { %2010 = vmatprep.subr.bf16.mxu1 %v2009_v42 }
 0x839   :  { %2012 = vmatpush3.bf16.msra.mxu1 %v2009_v42 }
 0x83a   :  { %2014 = vmatprep.subr.bf16.mxu1 %v2013_v43 }
 0x83d   :  { %2016 = vmatpush3.bf16.msra.mxu1 %v2013_v43 }
 0x83e   :  { %2018 = vmatprep.subr.bf16.mxu1 %v2017_v48 }
 0x840   :  { %1850 = vmatmul.mubr.msk.f32.vlgmr.msra.gmra.mrb[6].mxu1 %vm618_vm14, %v73_v44  ;;  %v879_v44 = vld [vmem:[%s3051_s6 + $0x88] sm:$0x3f] }
 0x841   :  { %1852 = vmatprep.mubr.msk.f32.mxu1 %vm618_vm14, %v74_v27  ;;  %2020 = vmatpush3.bf16.msra.mxu1 %v2017_v48  ;;  %v878_v27 = vld [vmem:[%s3051_s6 + $0x80] sm:$0x3f] }
 0x842   :  { %2022 = vmatprep.subr.bf16.mxu1 %v2021_v50  ;;  %1729 = vmatprep.subr.msk.mxu0 %vm917_vm1, %v879_v44  ;;  %v870_v48 = vld [vmem:[%s3051_s6 + $0x40] sm:$0xff] }
 0x843   :  { %v602_v55 = vpop.permute.xlu1 %601  ;;  %v606_v58 = vpop.permute.xlu0 %605  ;;  %1730 = vmatpush1.msk.msra.mxu0 %vm917_vm1, %v878_v27  ;;  %v2039_v49 = vpack.c.bf16 %v870_v48, %v864_v47 }
 0x844   :  { %1853 = vmatmul.mubr.msk.f32.gmra.mrb[8].mxu1 %vm618_vm14, %v75_v28  ;;  %v865_v28 = vld [vmem:[%s3051_s6 + $0x18] sm:$0xff]  ;;  %2077 = vmatprep.subr.bf16.mxu0 %v2296_v57 }
 0x845   :  { %2024 = vmatpush3.bf16.msra.mxu1 %v2021_v50  ;;  %v2037_v46 = vpack.c.bf16 %v871_v45, %v865_v28 }
 0x846   :  { %2026 = vmatprep.subr.bf16.mxu1 %v2025_v34 }
 0x847   :  { %v611_v59 = vpop.permute.xlu1 %610 }
 0x849   :  { %2028 = vmatpush3.bf16.msra.mxu1 %v2025_v34  ;;  %v876_v34 = vld [vmem:[%s3051_s6 + $0x70] sm:$0x3f] }
 0x84a   :  { %2030 = vmatprep.subr.bf16.mxu1 %v2029_v56 }
 0x84b   :  { %v616_v6 = vpop.permute.xlu1 %615 }
 0x84d   :  { %2032 = vmatpush3.bf16.msra.mxu1 %v2029_v56  ;;  %v1325_v56 = vld [vmem:[%s3052_s7 + $0x88] sm:$0xff] }
 0x84e   :  { %2034 = vmatprep.subr.bf16.mxu1 %v2033_v11 }
 0x913   :  { %v1851_v60 = vpop.f32.mrb[6].mxu1 }
 0x914   :  { %v703_v61 = vadd.f32 %v1851_v60, %v606_v58  ;;  %v697_v62 = vpop.f32.mrb[7].mxu1  ;;  %v1308_v58 = vld [vmem:[%s3052_s7] sm:$0xff]  ;;  %v1309_v60 = vld [vmem:[%s3052_s7 + $0x8] sm:$0xff] }
 0x915   :  { %v698_v63 = vadd.f32 %v697_v62, %v602_v55  ;;  %v1324_v55 = vld [vmem:[%s3052_s7 + $0x80] sm:$0xff]  ;;  %v1327_v62 = vld [vmem:[%s3052_s7 + $0x98] sm:$0xff] }
 0x916   :  { %v717_v0 = vmax.f32 %v703_v61, 0.0  ;;  %v1326_v61 = vld [vmem:[%s3052_s7 + $0x90] sm:$0xff] }
 0x917   :  { %v716_v1 = vmax.f32 %v698_v63, 0.0  ;;  %v1854_v3 = vpop.f32.mrb[8].mxu1  ;;  %v2047_v63 = vpack.c.bf16 %v1309_v60, %v1308_v58 }
 0x918   :  { %726 = vrot.lane.b32.xlu1 %v717_v0, %s2282_s18  ;;  %v707_v5 = vpop.f32.mrb[9].mxu1  ;;  %v713_v7 = vadd.f32 %v1854_v3, %v616_v6  ;;  %v1311_v3 = vld [vmem:[%s3052_s7 + $0x18] sm:$0xff] }
 0x919   :  { %724 = vrot.lane.b32.xlu0 %v716_v1, %s2282_s18  ;;  %v708_v8 = vadd.f32 %v707_v5, %v611_v59  ;;  %v2045_v59 = vpack.c.bf16 %v1325_v56, %v1324_v55 }
 0x91a   :  { %v719_v18 = vmax.f32 %v713_v7, 0.0 }
 0x91b   :  { %v718_v20 = vmax.f32 %v708_v8, 0.0  ;;  %v880_v8 = vld [vmem:[%s3051_s6 + $0x90] sm:$0xff] }
 0x91c   :  { %742 = vrot.lane.b32.xlu1 %v717_v0, %s2286_s21 }
 0x91d   :  { %740 = vrot.lane.b32.xlu0 %v716_v1, %s2286_s21 }
 0x920   :  { %730 = vrot.lane.b32.xlu1 %v719_v18, %s2282_s18 }
 0x921   :  { %728 = vrot.lane.b32.xlu0 %v718_v20, %s2282_s18 }
 0x924   :  { %746 = vrot.lane.b32.xlu1 %v719_v18, %s2286_s21 }
 0x925   :  { %744 = vrot.lane.b32.xlu0 %v718_v20, %s2286_s21 }
 0x98a   :  { %v727_v21 = vpop.permute.xlu1 %726 }
 0x98b   :  { %v725_v22 = vpop.permute.xlu0 %724  ;;  %v737_v53 = vmax.f32 %v717_v0, %v727_v21  ;;  %v2049_v0 = vpack.c.bf16 %v1327_v62, %v1326_v61 }
 0x98c   :  { %v736_v25 = vmax.f32 %v716_v1, %v725_v22  ;;  %v1310_v1 = vld [vmem:[%s3052_s7 + $0x10] sm:$0xff] }
 0x98d   :  { %v2051_v5 = vpack.c.bf16 %v1311_v3, %v1310_v1  ;;  %v1329_v1 = vld [vmem:[%s3052_s7 + $0xa8] sm:$0xff] }
 0x98e   :  { %v743_v4 = vpop.permute.xlu1 %742 }
 0x98f   :  { %v741_v26 = vpop.permute.xlu0 %740  ;;  %v753_v31 = vmax.f32 %v737_v53, %v743_v4 }
 0x990   :  { %v752_v29 = vmax.f32 %v736_v25, %v741_v26 }
 0x992   :  { %v731_v32 = vpop.permute.xlu1 %730  ;;  %1871 = vmatprep.mubr.msk.f32.mxu1 %vm764_vm0, %v752_v29 }
 0x993   :  { %1872 = vmatmul.mubr.msk.f32.vlgmr.msra.gmra.mrb[10].mxu1 %vm764_vm0, %v753_v31  ;;  %v729_v36 = vpop.permute.xlu0 %728  ;;  %v739_v40 = vmax.f32 %v719_v18, %v731_v32  ;;  %v891_v18 = vld [vmem:[%s3051_s6 + $0xe8] sm:$0xff]  ;;  %v892_v31 = vld [vmem:[%s3051_s6 + $0xf0] sm:$0xff] }
 0x994   :  { %2036 = vmatpush1.bf16.msra.mxu1 %v2035_v30  ;;  %v738_v38 = vmax.f32 %v718_v20, %v729_v36  ;;  %v896_v32 = vld [vmem:[%s3051_s6 + $0x110] sm:$0xff] }
 0x995   :  { %1717 = vmatprep.subr.msk.mxu1 %vm917_vm1, %v875_v35 }
 0x996   :  { %v747_v39 = vpop.permute.xlu1 %746 }
 0x997   :  { %v745_v41 = vpop.permute.xlu0 %744  ;;  %v755_v43 = vmax.f32 %v739_v40, %v747_v39 }
 0x998   :  { %v754_v42 = vmax.f32 %v738_v38, %v745_v41  ;;  %1718 = vmatpush1.msk.msra.mxu1 %vm917_vm1, %v874_v37  ;;  %v893_v37 = vld [vmem:[%s3051_s6 + $0xf8] sm:$0xff] }
 0x999   :  { %2038 = vmatprep.subr.bf16.mxu1 %v2037_v46  ;;  %v897_v38 = vld [vmem:[%s3051_s6 + $0x118] sm:$0xff] }
 0x99a   :  { %1874 = vmatprep.mubr.msk.f32.mxu1 %vm764_vm0, %v754_v42 }
 0x99b   :  { %1875 = vmatmul.mubr.msk.f32.gmra.mrb[12].mxu1 %vm764_vm0, %v755_v43 }
 0x99c   :  { %1000 = vmatprep.mubr.f32.mxu1 %v2281_v2 }
 0xa66   :  { %v1873_v50 = vpop.f32.mrb[10].mxu1 }
 0xa67   :  { %v843_v51 = vpop.f32.mrb[11].mxu1 }
 0xa68   :  { %1719 = vmatmul.mubr.msk.f32.vlgmr.msra.gmra.mrb[14].mxu1 %vm904_vm2, %v843_v51  ;;  %1731 = vmatmul.mubr.msk.f32.vlgmr.msra.gmra.mrb[4].mxu0 %vm904_vm2, %v843_v51 }
 0xa69   :  { %2040 = vmatpush1.bf16.msra.mxu1 %v2039_v49  ;;  %1006 = vmatprep.mubr.f32.mxu1 %v2281_v2  ;;  %v898_v49 = vld [vmem:[%s3051_s6 + $0x120] sm:$0xff] }
 0xa6a   :  { %1184 = vmatprep.mubr.f32.mxu0 %v2281_v2  ;;  %1723 = vmatprep.subr.msk.mxu1 %vm917_vm1, %v877_v33 }
 0xa6c   :  { %1720 = vmatmul.mubr.msk.f32.gmra.mrb[16].mxu1 %vm904_vm2, %v1873_v50  ;;  %1732 = vmatmul.mubr.msk.f32.gmra.mrb[6].mxu0 %vm904_vm2, %v1873_v50 }
 0xa6d   :  { %1012 = vmatprep.mubr.f32.mxu1 %v2281_v2  ;;  %1190 = vmatprep.mubr.f32.mxu0 %v2281_v2 }
 0xa6e   :  { %v1876_v52 = vpop.f32.mrb[12].mxu1  ;;  %1724 = vmatpush1.msk.msra.mxu1 %vm917_vm1, %v876_v34  ;;  %v899_v34 = vld [vmem:[%s3051_s6 + $0x128] sm:$0xff] }
 0xa6f   :  { %v853_v54 = vpop.f32.mrb[13].mxu1  ;;  %2046 = vmatprep.subr.bf16.mxu1 %v2045_v59 }
 0xa70   :  { %1721 = vmatmul.mubr.msk.f32.gmra.mrb[18].mxu1 %vm904_vm2, %v853_v54  ;;  %1733 = vmatmul.mubr.msk.f32.gmra.mrb[8].mxu0 %vm904_vm2, %v853_v54 }
 0xa71   :  { %1018 = vmatprep.mubr.f32.mxu1 %v2281_v2  ;;  %1196 = vmatprep.mubr.f32.mxu0 %v2281_v2 }
 0xa74   :  { %1722 = vmatmul.mubr.msk.f32.gmra.mrb[20].mxu1 %vm904_vm2, %v1876_v52  ;;  %1734 = vmatmul.mubr.msk.f32.gmra.mrb[10].mxu0 %vm904_vm2, %v1876_v52 }
 0xa75   :  { %1089 = vmatprep.mubr.f32.mxu1 %v2281_v2  ;;  %1901 = vmatprep.mubr.msk.f32.mxu0 %vm2299_vm4, %v2281_v2 }
 0xa78   :  { %1725 = vmatmul.mubr.msk.f32.vlgmr.msra.gmra.mrb[22].mxu1 %vm904_vm2, %v843_v51 }
 0xa79   :  { %1095 = vmatprep.mubr.f32.mxu1 %v2281_v2  ;;  %2048 = vmatpush3.bf16.msra.mxu1 %v2047_v63 }
 0xa7a   :  { %2050 = vmatprep.subr.bf16.mxu1 %v2049_v0  ;;  %v1328_v0 = vld [vmem:[%s3052_s7 + $0xa0] sm:$0xff] }
 0xa7c   :  { %1726 = vmatmul.mubr.msk.f32.gmra.mrb[24].mxu1 %vm904_vm2, %v1873_v50  ;;  %v902_v50 = vld [vmem:[%s3051_s6 + $0x140] sm:$0xff] }
 0xa7d   :  { %1101 = vmatprep.mubr.f32.mxu1 %v2281_v2  ;;  %2052 = vmatpush3.bf16.msra.mxu1 %v2051_v5 }
 0xa80   :  { %1727 = vmatmul.mubr.msk.f32.gmra.mrb[26].mxu1 %vm904_vm2, %v853_v54 }
 0xa81   :  { %1107 = vmatprep.mubr.f32.mxu1 %v2281_v2 }
 0xa84   :  { %1728 = vmatmul.mubr.msk.f32.gmra.mrb[28].mxu1 %vm904_vm2, %v1876_v52  ;;  %v903_v52 = vld [vmem:[%s3051_s6 + $0x148] sm:$0xff] }
 0xb3b   :  { %v1002_v6 = vpop.f32.mrb[14].mxu1  ;;  %v1180_v7 = vpop.f32.mrb[4].mxu0 }
 0xb3c   :  { %v1004_v9 = vpop.f32.mrb[15].mxu1  ;;  %v1182_v11 = vpop.f32.mrb[5].mxu0  ;;  %v1203_v22 = vmul.f32 %v1002_v6, %v880_v8  ;;  %v1207_v23 = vmul.f32 %v1180_v7, %v884_v12  ;;  %v2053_v6 = vpack.c.bf16 %v1329_v1, %v1328_v0  ;;  %v1312_v7 = vld [vmem:[%s3052_s7 + $0x20] sm:$0xff]  ;;  %v1313_v8 = vld [vmem:[%s3052_s7 + $0x28] sm:$0xff] }
 0xb3d   :  { %v1208_v19 = vmul.f32 %v1182_v11, %v885_v10  ;;  %v1204_v26 = vmul.f32 %v1004_v9, %v881_v15  ;;  %v882_v11 = vld [vmem:[%s3051_s6 + $0xa0] sm:$0xff]  ;;  %v2055_v12 = vpack.c.bf16 %v1313_v8, %v1312_v7  ;;  %v1330_v15 = vld [vmem:[%s3052_s7 + $0xb0] sm:$0xff]  ;;  %v1337_v0 = vld [vmem:[%s3052_s7 + $0xe8] sm:$0xff] }
 0xb3e   :  { %2054 = vmatprep.subr.bf16.mxu1 %v2053_v6 }
 0xb3f   :  { %v1008_v20 = vpop.f32.mrb[16].mxu1  ;;  %v1186_v21 = vpop.f32.mrb[6].mxu0  ;;  %v1272_v39 = vsel %vm764_vm0, %v1208_v19, 0.0  ;;  %2056 = vmatpush3.bf16.msra.mxu1 %v2055_v12 }
 0xb40   :  { %v1209_v24 = vmul.f32 %v1008_v20, %v886_v13  ;;  %v1213_v25 = vmul.f32 %v1186_v21, %v890_v14  ;;  %v1010_v4 = vpop.f32.mrb[17].mxu1  ;;  %v1188_v53 = vpop.f32.mrb[7].mxu0  ;;  %v1340_v13 = vld [vmem:[%s3052_s7 + $0x100] sm:$0xff]  ;;  %v1341_v14 = vld [vmem:[%s3052_s7 + $0x108] sm:$0xff]  ;;  %v888_v21 = vld [vmem:[%s3051_s6 + $0xd0] sm:$0xff] }
 0xb41   :  { %v1210_v29 = vmul.f32 %v1010_v4, %v887_v17  ;;  %v1214_v30 = vmul.f32 %v1188_v53, %v891_v18  ;;  %v883_v20 = vld [vmem:[%s3051_s6 + $0xa8] sm:$0xff] }
 0xb42   :  { %v1227_v35 = vadd.f32 %v1209_v24, %v1203_v22  ;;  %v1263_v36 = vadd.f32 %v1213_v25, %v1207_v23  ;;  %v2078_v22 = vpack.c.bf16 %v1341_v14, %v1340_v13  ;;  %v1331_v23 = vld [vmem:[%s3052_s7 + $0xb8] sm:$0xff]  ;;  %v1314_v24 = vld [vmem:[%s3052_s7 + $0x30] sm:$0xff]  ;;  %v1320_v14 = vld [vmem:[%s3052_s7 + $0x60] sm:$0xff] }
 0xb43   :  { %v1236_v40 = vadd.f32 %v1210_v29, %v1204_v26  ;;  %v1273_v41 = vsel %vm764_vm0, %v1214_v30, 0.0  ;;  %v1014_v42 = vpop.f32.mrb[18].mxu1  ;;  %v1192_v43 = vpop.f32.mrb[8].mxu0  ;;  %v1315_v25 = vld [vmem:[%s3052_s7 + $0x38] sm:$0xff]  ;;  %v1342_v30 = vld [vmem:[%s3052_s7 + $0x110] sm:$0xff] }
 0xb44   :  { %v1274_v44 = vadd.f32 %v1273_v41, %v1272_v39  ;;  %v1215_v27 = vmul.f32 %v1014_v42, %v892_v31  ;;  %v1219_v28 = vmul.f32 %v1192_v43, %v896_v32  ;;  %v1016_v45 = vpop.f32.mrb[19].mxu1  ;;  %v1194_v46 = vpop.f32.mrb[9].mxu0  ;;  %v889_v29 = vld [vmem:[%s3051_s6 + $0xd8] sm:$0xff]  ;;  %v1332_v32 = vld [vmem:[%s3052_s7 + $0xc0] sm:$0xff]  ;;  %2079 = vmatpush3.bf16.msra.mxu0 %v2078_v22  ;;  %v1317_v39 = vld [vmem:[%s3052_s7 + $0x48] sm:$0xff] }
 0xb45   :  { %v1216_v47 = vmul.f32 %v1016_v45, %v893_v37  ;;  %v1220_v48 = vmul.f32 %v1194_v46, %v897_v38  ;;  %v1343_v31 = vld [vmem:[%s3052_s7 + $0x118] sm:$0xff]  ;;  %v1333_v37 = vld [vmem:[%s3052_s7 + $0xc8] sm:$0xff]  ;;  %v1316_v38 = vld [vmem:[%s3052_s7 + $0x40] sm:$0xff]  ;;  %2080 = vmatprep.subr.bf16.mxu0 %v2296_v57 }
 0xb46   :  { %v1228_v51 = vadd.f32 %v1227_v35, %v1215_v27  ;;  %v1264_v33 = vadd.f32 %v1263_v36, %v1219_v28  ;;  %v2057_v35 = vpack.c.bf16 %v1331_v23, %v1330_v15  ;;  %v2059_v36 = vpack.c.bf16 %v1315_v25, %v1314_v24  ;;  %v1344_v42 = vld [vmem:[%s3052_s7 + $0x120] sm:$0xff]  ;;  %v1345_v43 = vld [vmem:[%s3052_s7 + $0x128] sm:$0xff]  ;;  %v1335_v46 = vld [vmem:[%s3052_s7 + $0xd8] sm:$0xff] }
 0xb47   :  { %v1237_v54 = vadd.f32 %v1236_v40, %v1216_v47  ;;  %v1275_v55 = vsel %vm764_vm0, %v1220_v48, 0.0  ;;  %v1020_v56 = vpop.f32.mrb[20].mxu1  ;;  %v1198_v58 = vpop.f32.mrb[10].mxu0  ;;  %v2081_v41 = vpack.c.bf16 %v1343_v31, %v1342_v30  ;;  %v2061_v45 = vpack.c.bf16 %v1333_v37, %v1332_v32  ;;  %v1321_v15 = vld [vmem:[%s3052_s7 + $0x68] sm:$0xff]  ;;  %v1338_v37 = vld [vmem:[%s3052_s7 + $0xf0] sm:$0xff] }
 0xb48   :  { %v1276_v59 = vadd.f32 %v1275_v55, %v1274_v44  ;;  %v1221_v60 = vmul.f32 %v1020_v56, %v898_v49  ;;  %v1225_v61 = vmul.f32 %v1198_v58, %v902_v50  ;;  %v1022_v62 = vpop.f32.mrb[21].mxu1  ;;  %v1200_v63 = vpop.f32.mrb[11].mxu0  ;;  %v1334_v44 = vld [vmem:[%s3052_s7 + $0xd0] sm:$0xff]  ;;  %2058 = vmatprep.subr.bf16.mxu1 %v2057_v35  ;;  %v1319_v58 = vld [vmem:[%s3052_s7 + $0x58] sm:$0xff]  ;;  %v1349_v22 = vld [vmem:[%s3052_s7 + $0x148] sm:$0xff] }
 0xb49   :  { %v1222_v3 = vmul.f32 %v1022_v62, %v899_v34  ;;  %v1226_v5 = vmul.f32 %v1200_v63, %v903_v52  ;;  %2060 = vmatpush3.bf16.msra.mxu1 %v2059_v36  ;;  %v2063_v34 = vpack.c.bf16 %v1317_v39, %v1316_v38  ;;  %2082 = vmatpush3.bf16.msra.mxu0 %v2081_v41  ;;  %v1318_v56 = vld [vmem:[%s3052_s7 + $0x50] sm:$0xff]  ;;  %v1347_v62 = vld [vmem:[%s3052_s7 + $0x138] sm:$0xff]  ;;  %v1336_v63 = vld [vmem:[%s3052_s7 + $0xe0] sm:$0xff] }
 0xb4a   :  { %v2797_v9 = vadd.f32 %v1228_v51, %v1221_v60  ;;  %v1265_v10 = vadd.f32 %v1264_v33, %v1225_v61  ;;  %v894_v51 = vld [vmem:[%s3051_s6 + $0x100] sm:$0xff]  ;;  %v895_v33 = vld [vmem:[%s3051_s6 + $0x108] sm:$0xff]  ;;  %2062 = vmatprep.subr.bf16.mxu1 %v2061_v45  ;;  %v2065_v55 = vpack.c.bf16 %v1335_v46, %v1334_v44  ;;  %2083 = vmatprep.subr.bf16.mxu0 %v2296_v57  ;;  %v1339_v38 = vld [vmem:[%s3052_s7 + $0xf8] sm:$0xff] }
 0xb4b   :  { %v2811_v17 = vadd.f32 %v1237_v54, %v1222_v3  ;;  %v1277_v18 = vsel %vm764_vm0, %v1226_v5, 0.0  ;;  %v1091_v19 = vpop.f32.mrb[22].mxu1  ;;  %v2084_v54 = vpack.c.bf16 %v1345_v43, %v1344_v42  ;;  %v2067_v8 = vpack.c.bf16 %v1319_v58, %v1318_v56  ;;  %v1322_v42 = vld [vmem:[%s3052_s7 + $0x70] sm:$0xff]  ;;  %v1323_v43 = vld [vmem:[%s3052_s7 + $0x78] sm:$0xff] }
 0xb4c   :  { %v1266_v4 = vrot.slane %v1265_v10, 4  ;;  %v2829_v53 = vadd.f32 %v1277_v18, %v1276_v59  ;;  %v1093_v26 = vpop.f32.mrb[23].mxu1  ;;  %v1205_v27 = vmul.f32 %v1091_v19, %v882_v11  ;;  %v1346_v59 = vld [vmem:[%s3052_s7 + $0x130] sm:$0xff]  ;;  %v2069_v13 = vpack.c.bf16 %v1337_v0, %v1336_v63  ;;  %v901_v19 = vld [vmem:[%s3051_s6 + $0x138] sm:$0xff] }
 0xb4d   :  { %v1206_v48 = vmul.f32 %v1093_v26, %v883_v20  ;;  %2064 = vmatpush3.bf16.msra.mxu1 %v2063_v34  ;;  %v900_v11 = vld [vmem:[%s3051_s6 + $0x130] sm:$0xff]  ;;  %2085 = vmatpush3.bf16.msra.mxu0 %v2084_v54  ;;  %v2087_v12 = vpack.c.bf16 %v1347_v62, %v1346_v59  ;;  %v2071_v26 = vpack.c.bf16 %v1321_v15, %v1320_v14 }
 0xb4e   :  { %v1267_v40 = vadd.f32 %v1266_v4, %v1265_v10  ;;  %2066 = vmatprep.subr.bf16.mxu1 %v2065_v55  ;;  %2086 = vmatprep.subr.bf16.mxu0 %v2296_v57  ;;  %v2073_v41 = vpack.c.bf16 %v1339_v38, %v1338_v37  ;;  %v1509_v37 = vld [vmem:[%s3053_s8 + $0x40] sm:$0xff]  ;;  %v1510_v38 = vld [vmem:[%s3053_s8 + $0x48] sm:$0xff] }
 0xb4f   :  { %v1097_v28 = vpop.f32.mrb[24].mxu1 }
 0xb50   :  { %v1268_v47 = vrot.slane %v1267_v40, 2  ;;  %v1211_v49 = vmul.f32 %v1097_v28, %v888_v21  ;;  %v1099_v50 = vpop.f32.mrb[25].mxu1  ;;  %v1348_v21 = vld [vmem:[%s3052_s7 + $0x140] sm:$0xff]  ;;  %v1350_v28 = vld [vmem:[%s3052_s7 + $0x150] sm:$0xff] }
 0xb51   :  { %v1212_v52 = vmul.f32 %v1099_v50, %v889_v29  ;;  %2068 = vmatpush3.bf16.msra.mxu1 %v2067_v8  ;;  %v1279_v29 = vrot.slane %v2829_v53, 4  ;;  %2088 = vmatpush3.bf16.msra.mxu0 %v2087_v12  ;;  %v2090_v31 = vpack.c.bf16 %v1349_v22, %v1348_v21  ;;  %v1501_v12 = vld [vmem:[%s3053_s8] sm:$0xff] }
 0xb52   :  { %v1245_v60 = vadd.f32 %v1211_v49, %v1205_v27  ;;  %v1269_v61 = vadd.f32 %v1268_v47, %v1267_v40  ;;  %2070 = vmatprep.subr.bf16.mxu1 %v2069_v13  ;;  %2089 = vmatprep.subr.bf16.mxu0 %v2296_v57  ;;  %v2075_v27 = vpack.c.bf16 %v1323_v43, %v1322_v42  ;;  %v1513_v43 = vld [vmem:[%s3053_s8 + $0x60] sm:$0xff] }
 0xb53   :  { %v1254_v1 = vadd.f32 %v1212_v52, %v1206_v48  ;;  %v1103_v3 = vpop.f32.mrb[26].mxu1  ;;  %v1280_v39 = vadd.f32 %v1279_v29, %v2829_v53  ;;  %v1351_v53 = vld [vmem:[%s3052_s7 + $0x158] sm:$0xff]  ;;  %v1505_v29 = vld [vmem:[%s3053_s8 + $0x20] sm:$0xff] }
 0xb54   :  { %v1217_v5 = vmul.f32 %v1103_v3, %v894_v51  ;;  %v1105_v6 = vpop.f32.mrb[27].mxu1  ;;  %v1270_v7 = vrot.slane %v1269_v61, 1  ;;  %v2093_v46 = vpack.c.bf16 %v1351_v53, %v1350_v28  ;;  %v1515_v28 = vld [vmem:[%s3053_s8 + $0x70] sm:$0xff]  ;;  %v1595_v53 = vld [vmem:[%s3054_s9] sm:$0xff] }
 0xb55   :  { %v1218_v10 = vmul.f32 %v1105_v6, %v895_v33  ;;  %2072 = vmatpush3.bf16.msra.mxu1 %v2071_v26  ;;  %2091 = vmatpush3.bf16.msra.mxu0 %v2090_v31  ;;  %v1281_v48 = vrot.slane %v1280_v39, 2 }
 0xb56   :  { %v1246_v18 = vadd.f32 %v1245_v60, %v1217_v5  ;;  %v1271_v20 = vadd.f32 %v1270_v7, %v1269_v61  ;;  %2092 = vmatprep.subr.bf16.mxu0 %v2296_v57  ;;  %2074 = vmatprep.subr.bf16.mxu1 %v2073_v41  ;;  %v1230_v60 = vrot.slane %v2797_v9, 4  ;;  %v1239_v61 = vrot.slane %v2811_v17, 4  ;;  %v1512_v41 = vld [vmem:[%s3053_s8 + $0x58] sm:$0xff] }
 0xb57   :  { %v1255_v23 = vadd.f32 %v1254_v1, %v1218_v10  ;;  %v1109_v24 = vpop.f32.mrb[28].mxu1  ;;  %v1282_v52 = vadd.f32 %v1281_v48, %v1280_v39  ;;  %v2108_v39 = vpack.c.bf16 %v1510_v38, %v1509_v37 }
 0xb58   :  { %v1223_v25 = vmul.f32 %v1109_v24, %v900_v11  ;;  %v1111_v4 = vpop.f32.mrb[29].mxu1  ;;  %1293 = vrot.lane.b32.xlu1 %v1271_v20, %s2298_s27  ;;  %v1231_v62 = vadd.f32 %v1230_v60, %v2797_v9  ;;  %v1240_v63 = vadd.f32 %v1239_v61, %v2811_v17  ;;  %v1502_v9 = vld [vmem:[%s3053_s8 + $0x8] sm:$0xff]  ;;  %v1503_v24 = vld [vmem:[%s3053_s8 + $0x10] sm:$0xff] }
 0xb59   :  { %v1224_v30 = vmul.f32 %v1111_v4, %v901_v19  ;;  %2076 = vmatpush3.bf16.msra.mxu1 %v2075_v27  ;;  %2094 = vmatpush3.bf16.msra.mxu0 %v2093_v46  ;;  %v1283_v58 = vrot.slane %v1282_v52, 1  ;;  %v2096_v22 = vpack.c.bf16 %v1502_v9, %v1501_v12  ;;  %v1597_v46 = vld [vmem:[%s3054_s9 + $0x10] sm:$0xff] }
 0xb5a   :  { %v1247_v32 = vadd.f32 %v1246_v18, %v1223_v25  ;;  %2116 = vmatprep.subr.bf16.mxu1 %v2296_v57  ;;  %2095 = vmatprep.subr.bf16.mxu0 %v2296_v57  ;;  %v1232_v0 = vrot.slane %v1231_v62, 2  ;;  %v1241_v1 = vrot.slane %v1240_v63, 2  ;;  %v1504_v25 = vld [vmem:[%s3053_s8 + $0x18] sm:$0xff]  ;;  %v1601_v61 = vld [vmem:[%s3054_s9 + $0x30] sm:$0xff] }
 0xb5b   :  { %v1256_v35 = vadd.f32 %v1255_v23, %v1224_v30  ;;  %v1284_v59 = vadd.f32 %v1283_v58, %v1282_v52  ;;  %v2099_v26 = vpack.c.bf16 %v1504_v25, %v1503_v24  ;;  %v1506_v30 = vld [vmem:[%s3053_s8 + $0x28] sm:$0xff] }
 0xb5c   :  { %v1248_v36 = vrot.slane %v1247_v32, 4  ;;  %v1233_v3 = vadd.f32 %v1232_v0, %v1231_v62  ;;  %v1242_v5 = vadd.f32 %v1241_v1, %v1240_v63  ;;  %v2102_v31 = vpack.c.bf16 %v1506_v30, %v1505_v29  ;;  %v1735_v52 = vld [vmem:[#allocation5] ss:$0 sm:$0xff]  ;;  %v1602_v62 = vld [vmem:[%s3054_s9 + $0x38] sm:$0xf] }
 0xb5d   :  { %v1257_v40 = vrot.slane %v1256_v35, 4  ;;  %v1737_v63 = vld [vmem:[#allocation5 + $0x1] ss:$0 sm:$0xff] }
 0xb5e   :  { %v1249_v44 = vadd.f32 %v1248_v36, %v1247_v32  ;;  %v1234_v6 = vrot.slane %v1233_v3, 1  ;;  %v1243_v7 = vrot.slane %v1242_v5, 1  ;;  %v1507_v32 = vld [vmem:[%s3053_s8 + $0x30] sm:$0xff] }
 0xb5f   :  { %v1258_v45 = vadd.f32 %v1257_v40, %v1256_v35  ;;  %v1508_v35 = vld [vmem:[%s3053_s8 + $0x38] sm:$0xff]  ;;  %v1511_v40 = vld [vmem:[%s3053_s8 + $0x50] sm:$0xff] }
 0xb60   :  { %v1250_v47 = vrot.slane %v1249_v44, 2  ;;  %v1235_v17 = vadd.f32 %v1234_v6, %v1233_v3  ;;  %v1244_v14 = vadd.f32 %v1243_v7, %v1242_v5  ;;  %v2105_v36 = vpack.c.bf16 %v1508_v35, %v1507_v32  ;;  %v1739_v6 = vld [vmem:[#allocation5 + $0x2] ss:$0 sm:$0xff] }
 0xb61   :  { %v1259_v49 = vrot.slane %v1258_v45, 2  ;;  %v2111_v42 = vpack.c.bf16 %v1512_v41, %v1511_v40 }
 0xb62   :  { %v1251_v50 = vadd.f32 %v1250_v47, %v1249_v44  ;;  %v1514_v44 = vld [vmem:[%s3053_s8 + $0x68] sm:$0xff] }
 0xb63   :  { %v1260_v51 = vadd.f32 %v1259_v49, %v1258_v45  ;;  %v2114_v27 = vpack.c.bf16 %v1514_v44, %v1513_v43  ;;  %v1596_v45 = vld [vmem:[%s3054_s9 + $0x8] sm:$0xff]  ;;  %v1599_v49 = vld [vmem:[%s3054_s9 + $0x20] sm:$0xff] }
 0xb64   :  { %v1252_v33 = vrot.slane %v1251_v50, 1  ;;  %v2117_v47 = vpack.c.bf16 %v1596_v45, %v1595_v53 }
 0xb65   :  { %v1261_v34 = vrot.slane %v1260_v51, 1 }
 0xb66   :  { %v1253_v54 = vadd.f32 %v1252_v33, %v1251_v50  ;;  %v1600_v50 = vld [vmem:[%s3054_s9 + $0x28] sm:$0xff] }
 0xb67   :  { %v1262_v55 = vadd.f32 %v1261_v34, %v1260_v51  ;;  %v2123_v51 = vpack.c.bf16 %v1600_v50, %v1599_v49 }
 0xb69   :  { %v2194_v56 = vpack.i.bf16 %v1253_v54, %v1262_v55 }
 0xb6b   :  { %2195 = vrot.lane.b32.xlu0 %v2194_v56, %s2298_s27 }
 0xb6f   :  { %1295 = vrot.lane.b32.xlu0 %v1284_v59, %s2298_s27 }
 0xbca   :  { %v1294_v13 = vpop.permute.xlu1 %1293 }
 0xbdd   :  { %v2196_v8 = vpop.permute.xlu0 %2195 }
 0xbde   :  { %v2198_v10 = vunpack.i.h.bf16 %v2196_v8  ;;  %v2197_v11 = vunpack.i.l.bf16 %v2196_v8 }
 0xbe0   :  { %v1298_v15 = vsel %vm1297_vm5, %v2198_v10, %v2197_v11  ;;  %v1299_v18 = vsel %vm1297_vm5, %v2197_v11, %v1294_v13 }
 0xbe1   :  { %v1296_v19 = vpop.permute.xlu0 %1295  ;;  %v1306_v20 = vsel %vm1304_vm6, %v1244_v14, %v1299_v18  ;;  %v1305_v21 = vsel %vm1304_vm6, %v1235_v17, %v1298_v15 }
 0xbe2   :  { %v1300_v23 = vsel %vm1297_vm5, %v1294_v13, %v1296_v19  ;;  %1424 = vmatprep.mubr.f32.mxu1 %v1306_v20 }
 0xbe3   :  { %v1307_v4 = vsel %vm1304_vm6, %v1253_v54, %v1300_v23  ;;  %1425 = vmatmul.mubr.f32.vlgmr.msra.gmra.mrb[30].mxu1 %v1305_v21 }
 0xbe4   :  { %1902 = vmatmul.mubr.msk.f32.vlgmr.msra.gmra.mrb[12].mxu0 %vm1356_vm7, %v1307_v4  ;;  %1953 = vmatprep.mubr.msk.f32.mxu1 %vm2299_vm4, %v2281_v2 }
 0xbe5   :  { %2097 = vmatpush3.bf16.msra.mxu0 %v2096_v22  ;;  %1934 = vmatprep.mubr.msk.f32.mxu0 %vm2299_vm4, %v2281_v2 }
 0xbe6   :  { %2098 = vmatprep.subr.bf16.mxu0 %v2296_v57  ;;  %2118 = vmatpush3.bf16.msra.mxu1 %v2117_v47 }
 0xbe7   :  { %2119 = vmatprep.subr.bf16.mxu1 %v2296_v57 }
 0xbe9   :  { %2100 = vmatpush3.bf16.msra.mxu0 %v2099_v26 }
 0xbea   :  { %2101 = vmatprep.subr.bf16.mxu0 %v2296_v57 }
 0xbed   :  { %2103 = vmatpush3.bf16.msra.mxu0 %v2102_v31 }
 0xbee   :  { %2104 = vmatprep.subr.bf16.mxu0 %v2296_v57 }
 0xbf1   :  { %2106 = vmatpush3.bf16.msra.mxu0 %v2105_v36 }
 0xbf2   :  { %2107 = vmatprep.subr.bf16.mxu0 %v2296_v57 }
 0xbf5   :  { %2109 = vmatpush3.bf16.msra.mxu0 %v2108_v39 }
 0xbf6   :  { %2110 = vmatprep.subr.bf16.mxu0 %v2296_v57 }
 0xbf9   :  { %2112 = vmatpush3.bf16.msra.mxu0 %v2111_v42 }
 0xbfa   :  { %2113 = vmatprep.subr.bf16.mxu0 %v2296_v57 }
 0xbfd   :  { %2115 = vmatpush3.bf16.msra.mxu0 %v2114_v27 }
 0xbfe   :  { %1932 = vmatprep.subr.mxu0 %v2281_v2  ;;  %v1598_v2 = vld [vmem:[%s3054_s9 + $0x18] sm:$0xff]  ;;  %s2249_s9 = scalar_lea.vmem %s1693_s14, 32 }
 0xbff   :  { %v2120_v48 = vpack.c.bf16 %v1598_v2, %v1597_v46  ;;  %p2250_p2 = scmp.ne.s32.totalorder %s1693_s14, %s2249_s9  ;;  %p2255_p4 = scmp.lt.s32.totalorder %s2249_s9, %s2249_s9 }
 0xc01   :  { %1933 = vmatpush3.msra.mxu0 %v1515_v28  ;;  %2121 = vmatpush3.bf16.msra.mxu1 %v2120_v48  ;;  %p2256_p5 = por %p2255_p4, %p2254_p3 }
 0xc02   :  { %2122 = vmatprep.subr.bf16.mxu1 %v2296_v57 }
 0xc03   :  { %p2257_p6 = pnand %p2256_p5, %p2250_p2 }
 0xc05   :  { %2124 = vmatpush3.bf16.msra.mxu1 %v2123_v51 }
 0xc06   :  { %2125 = vmatprep.subr.bf16.mxu1 %v2296_v57  ;;  %v2126_v57 = vpack.c.bf16 %v1602_v62, %v1601_v61 }
 0xc09   :  { %2128 = vmatpush3.bf16.msk.msra.mxu1 %vm2389_vm3, %v2126_v57 }
 0xcb6   :  { %v1796_v33 = vpop.f32.mrb[30].mxu1 }
 0xcb7   :  { %v1797_v34 = vpop.f32.mrb[31].mxu1  ;;  %v1496_v54 = vpop.f32.mrb[12].mxu0 }
 0xcb8   :  { %v1798_v55 = vadd.f32 %v1797_v34, %v1796_v33  ;;  %v1903_v56 = vpop.f32.mrb[13].mxu0 }
 0xcba   :  { %v1427_v58 = vadd.f32 %v1798_v55, %v1735_v52 }
 0xcbc   :  { %v1497_v59 = vadd.f32 %v1496_v54, %v1427_v58 }
 0xcbe   :  { %v1500_v60 = vmax.f32 %v1497_v59, 0.0 }
 0xcc0   :  { %1935 = vmatmul.mubr.msk.f32.vlgmr.msra.gmra.mrb[14].mxu0 %vm1520_vm8, %v1500_v60 }
 0xd93   :  { %v1590_v0 = vpop.f32.mrb[14].mxu0 }
 0xd94   :  { %v1591_v1 = vadd.f32 %v1737_v63, %v1590_v0  ;;  %v1936_v3 = vpop.f32.mrb[15].mxu0 }
 0xd96   :  { %v1594_v5 = vmax.f32 %v1591_v1, 0.0 }
 0xd98   :  { %1954 = vmatmul.mubr.msk.f32.vlgmr.msra.gmra.mrb[32].mxu1 %vm1607_vm9, %v1594_v5 }
 0xe6b   :  { %v1680_v7 = vpop.f32.mrb[32].mxu1 }
 0xe6c   :  { %v1681_v8 = vadd.f32 %v1739_v6, %v1680_v7  ;;  %v1955_v10 = vpop.f32.mrb[33].mxu1 }
 0xe6e   :  { %1685 = vst.msk [vmem:[#allocation7] sm:$0x3] %vm1684_vm10, %v1681_v8 }
 0xe6f   :  { %2260 = shalt.err (!%p2257_p6)
}
 0xe70   :  { %s2261_s3 = scalar_lea.hbm %s3055_s10, 32 }
 0xe71   :  { %p2262_p7 = scmp.ne.s32.totalorder %s3055_s10, %s2261_s3  ;;  %p2265_p8 = scmp.lt.u32.totalorder %s2261_s3, %s3055_s10 }
 0xe73   :  { %p2267_p9 = pnand %p2265_p8, %p2262_p7 }
 0xe75   :  { %2270 = shalt.err (!%p2267_p9)
}
 0xe76   :  { %1695 = dma.vmem_to_hbm [thread:$0]  %s1693_s14, 32, %s3055_s10, [#allocation4]  }
 0xe77   :  { %2275 = dma.done.wait [#allocation4], 32  }
 0xe78   :  { %2276 = vsyncadd [#allocation4], 4294967264 }
 0xe79   :  { %1699 = vsyncpa [#allocation3], 1 }
 0xe7a   :  { %1700 = vsyncpa [#allocation6], 1 }
 0xe7b   :  { %1701 = vsyncpa [#allocation4], 1 }

</bundles_post_ra>
